<compile_context>
chip_gen: v7x
topology: tpu7x:2x2x1
jax: 0.10.0
libtpu: 0.0.40
codegen_flags: <defaults>
</compile_context>

<pallas_src>
import functools

import jax
import jax.numpy as jnp
import numpy as np
from jax import lax
from jax.experimental import pallas as pl
from jax.experimental.pallas import tpu as pltpu


# ----------------------------------------------------------------------------
# Fused kernel (one grid step = one batch element, or the whole folded batch)
#   x     : (1, Cin, L)          NCHW with spatial (and optionally batch)
#                                flattened onto the lane axis
#   w1    : (Cmid, Cin)    f32   1x1 expand weights
#   b1    : (Cmid, 1)      f32
#   w2cat : (Cmid, k*k*Cmid) bf16  stacked-K grouped-conv weights
#   b2    : (Cmid, 1)      f32
#   w3    : (Cout, Cmid)   f32   1x1 projection weights
#   b3    : (Cout, 1)      f32
#   masks : (k*k, 1, L)    f32   1.0 where the tap reads inside its image
#   o     : (1, Cout, L)
#   h1p   : VMEM (Cmid, L+2*halo) f32   zero-haloed expanded activation
#   stk   : VMEM (k*k*Cmid, L)  bf16    stacked-K operand for the conv matmul
# ----------------------------------------------------------------------------
def _blaze_block_kernel(x_ref, w1_ref, b1_ref, w2_ref, b2_ref, w3_ref, b3_ref,
                        mask_ref, o_ref, h1p_ref, stk_ref,
                        *, W, k, halo, folded):
    pad = (k - 1) // 2
    Cmid = b1_ref.shape[0]
    L = x_ref.shape[-1]

    x = x_ref[0]                                            # (Cin, L) f32

    # --- 1x1 expand + ReLU6: one small MXU matmul (VALU stays free).
    h1 = jnp.dot(w1_ref[...], x, preferred_element_type=jnp.float32)
    h1 = jnp.clip(h1 + b1_ref[...], 0.0, 6.0)               # (Cmid, L) f32

    # --- Stage h1 in a zero-haloed VMEM scratch.  The halo supplies the
    #     vertical SAME-padding zeros and keeps every shifted slice in-bounds.
    #     (Zeroed every step: required for correctness under v7x core-parallel
    #     scratch and when the batch is folded.)
    h1p_ref[:, :halo] = jnp.zeros((Cmid, halo), jnp.float32)
    h1p_ref[:, halo + L:halo + L + halo] = jnp.zeros((Cmid, halo), jnp.float32)
    h1p_ref[:, halo:halo + L] = h1

    # --- Build the stacked-K operand: per tap a static lane-shifted slice,
    #     masked where the tap reads outside its own image, cast to bf16 and
    #     stored at an aligned row offset of the (k*k*Cmid, L) stack.
    for di in range(k):
        for dj in range(k):
            tap = di * k + dj
            s = (di - pad) * W + (dj - pad)
            if di == pad and dj == pad:
                shifted = h1                    # center tap: no shift, no mask
            else:
                shifted = h1p_ref[:, halo + s:halo + s + L]
                # Horizontal (row-wrap) invalidity always needs the mask.
                # Vertical overrun needs it only when the batch is folded on
                # the lane axis (otherwise the zero halo already covers it).
                if (dj != pad) or folded:
                    shifted = shifted * mask_ref[tap]
            stk_ref[tap * Cmid:(tap + 1) * Cmid, :] = shifted.astype(jnp.bfloat16)

    # --- Grouped kxk conv + ReLU6 as ONE stacked-K bf16 MXU matmul (K=k*k*Cmid);
    #     accumulation stays in the MXU f32 accumulator, not the VALU.
    h2 = jnp.dot(w2_ref[...], stk_ref[...], preferred_element_type=jnp.float32)
    h2 = jnp.clip(h2 + b2_ref[...], 0.0, 6.0)               # (Cmid, L) f32

    # --- 1x1 projection + bias + residual.  Output last dim is lane-dense
    #     (multiple of 128) so stores are unmasked vst.
    y = jnp.dot(w3_ref[...], h2, preferred_element_type=jnp.float32)
    o_ref[0] = y + b3_ref[...] + x


# ----------------------------------------------------------------------------
# Wrapper
# ----------------------------------------------------------------------------
def blaze_block_forward(kparams, x_nchw, *, kernel_size=3, fold_batch=True):
    """Fused Pallas forward for BlazeBlock.  x: (N, C, H, W) float32, NCHW.

    fold_batch=True : batch folded onto the lane axis, single grid step
                      (best on single-TensorCore v5e / v6e).
    fold_batch=False: grid=(N,), "parallel" — keeps the 2-TC split on v7x.
    """
    N, Cin, H, W = x_nchw.shape
    HW = H * W
    k = kernel_size
    pad = (k - 1) // 2
    Cmid = kparams["b1"].shape[0]
    Cout = kparams["w3"].shape[0]
    assert Cout == Cin, "BlazeBlock's residual add needs out == in channels"

    halo = ((pad * W + pad + 127) // 128) * 128            # lane-tile aligned
    masks = kparams["masks"]

    if fold_batch:
        L = N * HW
        x3 = x_nchw.transpose(1, 0, 2, 3).reshape(1, Cin, L)   # 16 KiB, free-ish
        masks = jnp.tile(masks, (1, 1, N))
        grid = (1,)
        nb = 1
        bmap = lambda n: (0, 0, 0)
    else:
        L = HW
        x3 = x_nchw.reshape(N, Cin, HW)                        # free reshape
        grid = (N,)
        nb = N
        bmap = lambda n: (n, 0, 0)

    kernel = functools.partial(_blaze_block_kernel, W=W, k=k, halo=halo,
                               folded=fold_batch)
    out = pl.pallas_call(
        kernel,
        out_shape=jax.ShapeDtypeStruct((nb, Cout, L), jnp.float32),
        grid=grid,
        in_specs=[
            pl.BlockSpec((1, Cin, L), bmap),
            pl.BlockSpec((Cmid, Cin), lambda n: (0, 0)),
            pl.BlockSpec((Cmid, 1), lambda n: (0, 0)),
            pl.BlockSpec((Cmid, k * k * Cmid), lambda n: (0, 0)),
            pl.BlockSpec((Cmid, 1), lambda n: (0, 0)),
            pl.BlockSpec((Cout, Cmid), lambda n: (0, 0)),
            pl.BlockSpec((Cout, 1), lambda n: (0, 0)),
            pl.BlockSpec((k * k, 1, L), lambda n: (0, 0, 0)),
        ],
        out_specs=pl.BlockSpec((1, Cout, L), bmap),
        scratch_shapes=[
            pltpu.VMEM((Cmid, L + 2 * halo), jnp.float32),     # haloed h1
            pltpu.VMEM((k * k * Cmid, L), jnp.bfloat16),       # stacked-K taps
        ],
        compiler_params=pltpu.CompilerParams(
            dimension_semantics=("parallel",)),
    )(x3, kparams["w1"], kparams["b1"], kparams["w2cat"], kparams["b2"],
      kparams["w3"], kparams["b3"], masks)

    if fold_batch:
        return out.reshape(Cout, N, H, W).transpose(1, 0, 2, 3)
    return out.reshape(N, Cout, H, W)


# ----------------------------------------------------------------------------
# Parameters (PyTorch-equivalent layouts) + one-time host-side repacking
# ----------------------------------------------------------------------------
def init_blaze_block_params(key, in_channels, out_channels, kernel_size=3, t=6):
    c_mid = in_channels * t
    k = kernel_size
    ks = jax.random.split(key, 6)
    s = 0.1
    return {
        "w1": s * jax.random.normal(ks[0], (c_mid, in_channels), jnp.float32),
        "b1": s * jax.random.normal(ks[1], (c_mid,), jnp.float32),
        # grouped conv (groups=in_channels) in OIHW with I = t
        "w2": s * jax.random.normal(ks[2], (c_mid, t, k, k), jnp.float32),
        "b2": s * jax.random.normal(ks[3], (c_mid,), jnp.float32),
        "w3": s * jax.random.normal(ks[4], (out_channels, c_mid), jnp.float32),
        "b3": s * jax.random.normal(ks[5], (out_channels,), jnp.float32),
    }


def prepare_kernel_params(params, groups, image_hw, kernel_size=3):
    """One-time host-side repack into kernel-friendly layouts (glue only)."""
    H, W = image_hw
    k = kernel_size
    pad = (k - 1) // 2
    HW = H * W
    w2 = np.asarray(params["w2"])                     # (Cmid, t, k, k)
    c_mid, t = w2.shape[0], w2.shape[1]

    # grouped-conv weights -> ONE stacked-K (Cmid, k*k*Cmid) matrix whose
    # column tap*Cmid + ci multiplies the tap-shifted activation of channel ci.
    w2cat = np.zeros((c_mid, k * k * c_mid), np.float32)
    for di in range(k):
        for dj in range(k):
            tap = di * k + dj
            for g in range(groups):
                w2cat[g * t:(g + 1) * t,
                      tap * c_mid + g * t:tap * c_mid + (g + 1) * t] = \
                    w2[g * t:(g + 1) * t, :, di, dj]

    # per-tap validity masks over the flattened H*W lane axis
    hpos, wpos = np.meshgrid(np.arange(H), np.arange(W), indexing="ij")
    masks = np.zeros((k * k, 1, HW), np.float32)
    for di in range(k):
        for dj in range(k):
            ri, rj = di - pad, dj - pad
            ok = ((hpos + ri >= 0) & (hpos + ri < H) &
                  (wpos + rj >= 0) & (wpos + rj < W))
            masks[di * k + dj, 0] = ok.reshape(HW).astype(np.float32)

    return {
        "w1": jnp.asarray(params["w1"], jnp.float32),      # (Cmid, Cin)
        "b1": params["b1"][:, None],                       # (Cmid, 1)
        "w2cat": jnp.asarray(w2cat, jnp.bfloat16),         # (Cmid, k*k*Cmid)
        "b2": params["b2"][:, None],
        "w3": jnp.asarray(params["w3"], jnp.float32),      # (Cout, Cmid)
        "b3": params["b3"][:, None],
        "masks": jnp.asarray(masks),                       # (k*k, 1, HW)
    }


# ----------------------------------------------------------------------------
# Pure-JAX reference (sanity check for the Pallas path)
# ----------------------------------------------------------------------------
def reference_forward(params, x, *, kernel_size=3):
    k = kernel_size
    pad = (k - 1) // 2
    groups = x.shape[1]
    dn = ("NCHW", "OIHW", "NCHW")
    hp = lax.Precision.HIGHEST
    y = lax.conv_general_dilated(x, params["w1"][:, :, None, None], (1, 1),
                                 "VALID", dimension_numbers=dn, precision=hp)
    y = jnp.clip(y + params["b1"][None, :, None, None], 0.0, 6.0)
    y = lax.conv_general_dilated(y, params["w2"], (1, 1),
                                 [(pad, pad), (pad, pad)],
                                 dimension_numbers=dn,
                                 feature_group_count=groups, precision=hp)
    y = jnp.clip(y + params["b2"][None, :, None, None], 0.0, 6.0)
    y = lax.conv_general_dilated(y, params["w3"][:, :, None, None], (1, 1),
                                 "VALID", dimension_numbers=dn, precision=hp)
    y = y + params["b3"][None, :, None, None]
    return y + x


if __name__ == "__main__":
    # BlazeBlock's forward adds x back, so out_channels must equal in_channels.
    N, C, H, W = 2, 8, 16, 16
    kernel_size, t = 3, 6

    key = jax.random.PRNGKey(0)
    kx, kp = jax.random.split(key)
    x = jax.random.normal(kx, (N, C, H, W), jnp.float32)
    params = init_blaze_block_params(kp, C, C, kernel_size, t)
    kparams = prepare_kernel_params(params, groups=C, image_hw=(H, W),
                                    kernel_size=kernel_size)

    ref = jax.block_until_ready(reference_forward(params, x,
                                                  kernel_size=kernel_size))

    # Folded-batch single-step variant (preferred on single-TC v5e / v6e).
    fwd_folded = jax.jit(functools.partial(
        blaze_block_forward, kernel_size=kernel_size, fold_batch=True))
    out_f = jax.block_until_ready(fwd_folded(kparams, x))
    assert out_f.shape == (N, C, H, W), out_f.shape
    err_f = float(jnp.max(jnp.abs(out_f - ref)))
    assert jnp.allclose(out_f, ref, atol=2e-2, rtol=2e-2), err_f

    # Per-batch-element grid variant (keeps the 2-TensorCore split on v7x).
    fwd_grid = jax.jit(functools.partial(
        blaze_block_forward, kernel_size=kernel_size, fold_batch=False))
    out_g = jax.block_until_ready(fwd_grid(kparams, x))
    err_g = float(jnp.max(jnp.abs(out_g - ref)))
    assert jnp.allclose(out_g, ref, atol=2e-2, rtol=2e-2), err_g

    print("KERNEL_OK")
</pallas_src>

<mosaic_0001>
module attributes {stable_mosaic.version = 11 : i64} {
  func.func @_blaze_block_kernel(%arg0: i32, %arg1: memref<1x8x512xf32, #tpu.memory_space<vmem>>, %arg2: memref<48x8xf32, #tpu.memory_space<vmem>>, %arg3: memref<48x1xf32, #tpu.memory_space<vmem>>, %arg4: memref<48x432xbf16, #tpu.memory_space<vmem>>, %arg5: memref<48x1xf32, #tpu.memory_space<vmem>>, %arg6: memref<8x48xf32, #tpu.memory_space<vmem>>, %arg7: memref<8x1xf32, #tpu.memory_space<vmem>>, %arg8: memref<9x1x512xf32, #tpu.memory_space<vmem>>, %arg9: memref<1x8x512xf32, #tpu.memory_space<vmem>>, %arg10: memref<48x768xf32, #tpu.memory_space<vmem>>, %arg11: memref<432x512xbf16, #tpu.memory_space<vmem>>) attributes {dimension_semantics = [#tpu.dimension_semantics<parallel>], iteration_bounds = array<i64: 1>, scalar_prefetch = 0 : i64, scratch_operands = 2 : i64, tpu.core_type = #tpu.core_type<tc>, window_params = [{pipeline_mode = #tpu.pipeline_mode<synchronous>, transform_indices = @transform_0, window_bounds = array<i64: 1, 8, 512>}, {pipeline_mode = #tpu.pipeline_mode<synchronous>, transform_indices = @transform_1, window_bounds = array<i64: 48, 8>}, {pipeline_mode = #tpu.pipeline_mode<synchronous>, transform_indices = @transform_2, window_bounds = array<i64: 48, 1>}, {pipeline_mode = #tpu.pipeline_mode<synchronous>, transform_indices = @transform_3, window_bounds = array<i64: 48, 432>}, {pipeline_mode = #tpu.pipeline_mode<synchronous>, transform_indices = @transform_4, window_bounds = array<i64: 48, 1>}, {pipeline_mode = #tpu.pipeline_mode<synchronous>, transform_indices = @transform_5, window_bounds = array<i64: 8, 48>}, {pipeline_mode = #tpu.pipeline_mode<synchronous>, transform_indices = @transform_6, window_bounds = array<i64: 8, 1>}, {pipeline_mode = #tpu.pipeline_mode<synchronous>, transform_indices = @transform_7, window_bounds = array<i64: 9, 1, 512>}, {pipeline_mode = #tpu.pipeline_mode<synchronous>, transform_indices = @transform_8, window_bounds = array<i64: 1, 8, 512>}]} {
    %c0 = arith.constant 0 : index
    %c0_0 = arith.constant 0 : index
    %c0_1 = arith.constant 0 : index
    %0 = vector.load %arg1[%c0, %c0_0, %c0_1] : memref<1x8x512xf32, #tpu.memory_space<vmem>>, vector<1x8x512xf32>
    %1 = vector.shape_cast %0 : vector<1x8x512xf32> to vector<8x512xf32>
    %c0_2 = arith.constant 0 : index
    %c0_3 = arith.constant 0 : index
    %2 = vector.load %arg2[%c0_2, %c0_3] : memref<48x8xf32, #tpu.memory_space<vmem>>, vector<48x8xf32>
    %cst = arith.constant dense<0.000000e+00> : vector<48x512xf32>
    %3 = tpu.matmul %2, %1, %cst {dimension_numbers = #tpu.dot_dimension_numbers<[1], [0], [0], [1], [0, 0, 1, 1], [], []>} : vector<48x8xf32>, vector<8x512xf32>, vector<48x512xf32> -> vector<48x512xf32>
    %c0_4 = arith.constant 0 : index
    %c0_5 = arith.constant 0 : index
    %4 = vector.load %arg3[%c0_4, %c0_5] : memref<48x1xf32, #tpu.memory_space<vmem>>, vector<48x1xf32>
    %5 = vector.broadcast %4 : vector<48x1xf32> to vector<48x512xf32>
    %6 = arith.addf %3, %5 : vector<48x512xf32>
    %cst_6 = arith.constant 0.000000e+00 : f32
    %cst_7 = arith.constant 6.000000e+00 : f32
    %7 = vector.broadcast %cst_6 : f32 to vector<48x512xf32>
    %8 = arith.maximumf %7, %6 : vector<48x512xf32>
    %9 = vector.broadcast %cst_7 : f32 to vector<48x512xf32>
    %10 = arith.minimumf %9, %8 : vector<48x512xf32>
    %cst_8 = arith.constant 0.000000e+00 : f32
    %11 = vector.broadcast %cst_8 : f32 to vector<48x128xf32>
    %c0_9 = arith.constant 0 : index
    %c0_10 = arith.constant 0 : index
    %12 = vector.load %arg10[%c0_9, %c0_10] : memref<48x768xf32, #tpu.memory_space<vmem>>, vector<48x128xf32>
    tpu.vector_store %arg10[%c0_9, %c0_10], %11 {strides = array<i32>} : memref<48x768xf32, #tpu.memory_space<vmem>>, vector<48x128xf32>,
    %cst_11 = arith.constant 0.000000e+00 : f32
    %13 = vector.broadcast %cst_11 : f32 to vector<48x128xf32>
    %c0_12 = arith.constant 0 : index
    %c640 = arith.constant 640 : index
    %14 = vector.load %arg10[%c0_12, %c640] : memref<48x768xf32, #tpu.memory_space<vmem>>, vector<48x128xf32>
    tpu.vector_store %arg10[%c0_12, %c640], %13 {strides = array<i32>} : memref<48x768xf32, #tpu.memory_space<vmem>>, vector<48x128xf32>,
    %c0_13 = arith.constant 0 : index
    %c128 = arith.constant 128 : index
    %15 = vector.load %arg10[%c0_13, %c128] : memref<48x768xf32, #tpu.memory_space<vmem>>, vector<48x512xf32>
    tpu.vector_store %arg10[%c0_13, %c128], %10 {strides = array<i32>} : memref<48x768xf32, #tpu.memory_space<vmem>>, vector<48x512xf32>,
    %c0_14 = arith.constant 0 : index
    %c111 = arith.constant 111 : index
    %16 = vector.load %arg10[%c0_14, %c111] : memref<48x768xf32, #tpu.memory_space<vmem>>, vector<48x512xf32>
    %c0_15 = arith.constant 0 : index
    %c0_16 = arith.constant 0 : index
    %c0_17 = arith.constant 0 : index
    %17 = vector.load %arg8[%c0_15, %c0_16, %c0_17] : memref<9x1x512xf32, #tpu.memory_space<vmem>>, vector<1x1x512xf32>
    %18 = vector.shape_cast %17 : vector<1x1x512xf32> to vector<1x512xf32>
    %19 = vector.broadcast %18 : vector<1x512xf32> to vector<48x512xf32>
    %20 = arith.mulf %16, %19 : vector<48x512xf32>
    %21 = arith.truncf %20 : vector<48x512xf32> to vector<48x512xbf16>
    %c0_18 = arith.constant 0 : index
    %c0_19 = arith.constant 0 : index
    %22 = vector.load %arg11[%c0_18, %c0_19] : memref<432x512xbf16, #tpu.memory_space<vmem>>, vector<48x512xbf16>
    tpu.vector_store %arg11[%c0_18, %c0_19], %21 {strides = array<i32>} : memref<432x512xbf16, #tpu.memory_space<vmem>>, vector<48x512xbf16>,
    %c0_20 = arith.constant 0 : index
    %c112 = arith.constant 112 : index
    %23 = vector.load %arg10[%c0_20, %c112] : memref<48x768xf32, #tpu.memory_space<vmem>>, vector<48x512xf32>
    %c1 = arith.constant 1 : index
    %c0_21 = arith.constant 0 : index
    %c0_22 = arith.constant 0 : index
    %24 = vector.load %arg8[%c1, %c0_21, %c0_22] : memref<9x1x512xf32, #tpu.memory_space<vmem>>, vector<1x1x512xf32>
    %25 = vector.shape_cast %24 : vector<1x1x512xf32> to vector<1x512xf32>
    %26 = vector.broadcast %25 : vector<1x512xf32> to vector<48x512xf32>
    %27 = arith.mulf %23, %26 : vector<48x512xf32>
    %28 = arith.truncf %27 : vector<48x512xf32> to vector<48x512xbf16>
    %c48 = arith.constant 48 : index
    %c0_23 = arith.constant 0 : index
    %29 = vector.load %arg11[%c48, %c0_23] : memref<432x512xbf16, #tpu.memory_space<vmem>>, vector<48x512xbf16>
    tpu.vector_store %arg11[%c48, %c0_23], %28 {strides = array<i32>} : memref<432x512xbf16, #tpu.memory_space<vmem>>, vector<48x512xbf16>,
    %c0_24 = arith.constant 0 : index
    %c113 = arith.constant 113 : index
    %30 = vector.load %arg10[%c0_24, %c113] : memref<48x768xf32, #tpu.memory_space<vmem>>, vector<48x512xf32>
    %c2 = arith.constant 2 : index
    %c0_25 = arith.constant 0 : index
    %c0_26 = arith.constant 0 : index
    %31 = vector.load %arg8[%c2, %c0_25, %c0_26] : memref<9x1x512xf32, #tpu.memory_space<vmem>>, vector<1x1x512xf32>
    %32 = vector.shape_cast %31 : vector<1x1x512xf32> to vector<1x512xf32>
    %33 = vector.broadcast %32 : vector<1x512xf32> to vector<48x512xf32>
    %34 = arith.mulf %30, %33 : vector<48x512xf32>
    %35 = arith.truncf %34 : vector<48x512xf32> to vector<48x512xbf16>
    %c96 = arith.constant 96 : index
    %c0_27 = arith.constant 0 : index
    %36 = vector.load %arg11[%c96, %c0_27] : memref<432x512xbf16, #tpu.memory_space<vmem>>, vector<48x512xbf16>
    tpu.vector_store %arg11[%c96, %c0_27], %35 {strides = array<i32>} : memref<432x512xbf16, #tpu.memory_space<vmem>>, vector<48x512xbf16>,
    %c0_28 = arith.constant 0 : index
    %c127 = arith.constant 127 : index
    %37 = vector.load %arg10[%c0_28, %c127] : memref<48x768xf32, #tpu.memory_space<vmem>>, vector<48x512xf32>
    %c3 = arith.constant 3 : index
    %c0_29 = arith.constant 0 : index
    %c0_30 = arith.constant 0 : index
    %38 = vector.load %arg8[%c3, %c0_29, %c0_30] : memref<9x1x512xf32, #tpu.memory_space<vmem>>, vector<1x1x512xf32>
    %39 = vector.shape_cast %38 : vector<1x1x512xf32> to vector<1x512xf32>
    %40 = vector.broadcast %39 : vector<1x512xf32> to vector<48x512xf32>
    %41 = arith.mulf %37, %40 : vector<48x512xf32>
    %42 = arith.truncf %41 : vector<48x512xf32> to vector<48x512xbf16>
    %c144 = arith.constant 144 : index
    %c0_31 = arith.constant 0 : index
    %43 = vector.load %arg11[%c144, %c0_31] : memref<432x512xbf16, #tpu.memory_space<vmem>>, vector<48x512xbf16>
    tpu.vector_store %arg11[%c144, %c0_31], %42 {strides = array<i32>} : memref<432x512xbf16, #tpu.memory_space<vmem>>, vector<48x512xbf16>,
    %44 = arith.truncf %10 : vector<48x512xf32> to vector<48x512xbf16>
    %c192 = arith.constant 192 : index
    %c0_32 = arith.constant 0 : index
    %45 = vector.load %arg11[%c192, %c0_32] : memref<432x512xbf16, #tpu.memory_space<vmem>>, vector<48x512xbf16>
    tpu.vector_store %arg11[%c192, %c0_32], %44 {strides = array<i32>} : memref<432x512xbf16, #tpu.memory_space<vmem>>, vector<48x512xbf16>,
    %c0_33 = arith.constant 0 : index
    %c129 = arith.constant 129 : index
    %46 = vector.load %arg10[%c0_33, %c129] : memref<48x768xf32, #tpu.memory_space<vmem>>, vector<48x512xf32>
    %c5 = arith.constant 5 : index
    %c0_34 = arith.constant 0 : index
    %c0_35 = arith.constant 0 : index
    %47 = vector.load %arg8[%c5, %c0_34, %c0_35] : memref<9x1x512xf32, #tpu.memory_space<vmem>>, vector<1x1x512xf32>
    %48 = vector.shape_cast %47 : vector<1x1x512xf32> to vector<1x512xf32>
    %49 = vector.broadcast %48 : vector<1x512xf32> to vector<48x512xf32>
    %50 = arith.mulf %46, %49 : vector<48x512xf32>
    %51 = arith.truncf %50 : vector<48x512xf32> to vector<48x512xbf16>
    %c240 = arith.constant 240 : index
    %c0_36 = arith.constant 0 : index
    %52 = vector.load %arg11[%c240, %c0_36] : memref<432x512xbf16, #tpu.memory_space<vmem>>, vector<48x512xbf16>
    tpu.vector_store %arg11[%c240, %c0_36], %51 {strides = array<i32>} : memref<432x512xbf16, #tpu.memory_space<vmem>>, vector<48x512xbf16>,
    %c0_37 = arith.constant 0 : index
    %c143 = arith.constant 143 : index
    %53 = vector.load %arg10[%c0_37, %c143] : memref<48x768xf32, #tpu.memory_space<vmem>>, vector<48x512xf32>
    %c6 = arith.constant 6 : index
    %c0_38 = arith.constant 0 : index
    %c0_39 = arith.constant 0 : index
    %54 = vector.load %arg8[%c6, %c0_38, %c0_39] : memref<9x1x512xf32, #tpu.memory_space<vmem>>, vector<1x1x512xf32>
    %55 = vector.shape_cast %54 : vector<1x1x512xf32> to vector<1x512xf32>
    %56 = vector.broadcast %55 : vector<1x512xf32> to vector<48x512xf32>
    %57 = arith.mulf %53, %56 : vector<48x512xf32>
    %58 = arith.truncf %57 : vector<48x512xf32> to vector<48x512xbf16>
    %c288 = arith.constant 288 : index
    %c0_40 = arith.constant 0 : index
    %59 = vector.load %arg11[%c288, %c0_40] : memref<432x512xbf16, #tpu.memory_space<vmem>>, vector<48x512xbf16>
    tpu.vector_store %arg11[%c288, %c0_40], %58 {strides = array<i32>} : memref<432x512xbf16, #tpu.memory_space<vmem>>, vector<48x512xbf16>,
    %c0_41 = arith.constant 0 : index
    %c144_42 = arith.constant 144 : index
    %60 = vector.load %arg10[%c0_41, %c144_42] : memref<48x768xf32, #tpu.memory_space<vmem>>, vector<48x512xf32>
    %c7 = arith.constant 7 : index
    %c0_43 = arith.constant 0 : index
    %c0_44 = arith.constant 0 : index
    %61 = vector.load %arg8[%c7, %c0_43, %c0_44] : memref<9x1x512xf32, #tpu.memory_space<vmem>>, vector<1x1x512xf32>
    %62 = vector.shape_cast %61 : vector<1x1x512xf32> to vector<1x512xf32>
    %63 = vector.broadcast %62 : vector<1x512xf32> to vector<48x512xf32>
    %64 = arith.mulf %60, %63 : vector<48x512xf32>
    %65 = arith.truncf %64 : vector<48x512xf32> to vector<48x512xbf16>
    %c336 = arith.constant 336 : index
    %c0_45 = arith.constant 0 : index
    %66 = vector.load %arg11[%c336, %c0_45] : memref<432x512xbf16, #tpu.memory_space<vmem>>, vector<48x512xbf16>
    tpu.vector_store %arg11[%c336, %c0_45], %65 {strides = array<i32>} : memref<432x512xbf16, #tpu.memory_space<vmem>>, vector<48x512xbf16>,
    %c0_46 = arith.constant 0 : index
    %c145 = arith.constant 145 : index
    %67 = vector.load %arg10[%c0_46, %c145] : memref<48x768xf32, #tpu.memory_space<vmem>>, vector<48x512xf32>
    %c8 = arith.constant 8 : index
    %c0_47 = arith.constant 0 : index
    %c0_48 = arith.constant 0 : index
    %68 = vector.load %arg8[%c8, %c0_47, %c0_48] : memref<9x1x512xf32, #tpu.memory_space<vmem>>, vector<1x1x512xf32>
    %69 = vector.shape_cast %68 : vector<1x1x512xf32> to vector<1x512xf32>
    %70 = vector.broadcast %69 : vector<1x512xf32> to vector<48x512xf32>
    %71 = arith.mulf %67, %70 : vector<48x512xf32>
    %72 = arith.truncf %71 : vector<48x512xf32> to vector<48x512xbf16>
    %c384 = arith.constant 384 : index
    %c0_49 = arith.constant 0 : index
    %73 = vector.load %arg11[%c384, %c0_49] : memref<432x512xbf16, #tpu.memory_space<vmem>>, vector<48x512xbf16>
    tpu.vector_store %arg11[%c384, %c0_49], %72 {strides = array<i32>} : memref<432x512xbf16, #tpu.memory_space<vmem>>, vector<48x512xbf16>,
    %c0_50 = arith.constant 0 : index
    %c0_51 = arith.constant 0 : index
    %74 = vector.load %arg4[%c0_50, %c0_51] : memref<48x432xbf16, #tpu.memory_space<vmem>>, vector<48x432xbf16>
    %c0_52 = arith.constant 0 : index
    %c0_53 = arith.constant 0 : index
    %75 = vector.load %arg11[%c0_52, %c0_53] : memref<432x512xbf16, #tpu.memory_space<vmem>>, vector<432x512xbf16>
    %cst_54 = arith.constant dense<0.000000e+00> : vector<48x512xf32>
    %76 = tpu.matmul %74, %75, %cst_54 {dimension_numbers = #tpu.dot_dimension_numbers<[1], [0], [0], [1], [0, 0, 1, 1], [], []>} : vector<48x432xbf16>, vector<432x512xbf16>, vector<48x512xf32> -> vector<48x512xf32>
    %c0_55 = arith.constant 0 : index
    %c0_56 = arith.constant 0 : index
    %77 = vector.load %arg5[%c0_55, %c0_56] : memref<48x1xf32, #tpu.memory_space<vmem>>, vector<48x1xf32>
    %78 = vector.broadcast %77 : vector<48x1xf32> to vector<48x512xf32>
    %79 = arith.addf %76, %78 : vector<48x512xf32>
    %cst_57 = arith.constant 0.000000e+00 : f32
    %cst_58 = arith.constant 6.000000e+00 : f32
    %80 = vector.broadcast %cst_57 : f32 to vector<48x512xf32>
    %81 = arith.maximumf %80, %79 : vector<48x512xf32>
    %82 = vector.broadcast %cst_58 : f32 to vector<48x512xf32>
    %83 = arith.minimumf %82, %81 : vector<48x512xf32>
    %c0_59 = arith.constant 0 : index
    %c0_60 = arith.constant 0 : index
    %84 = vector.load %arg6[%c0_59, %c0_60] : memref<8x48xf32, #tpu.memory_space<vmem>>, vector<8x48xf32>
    %cst_61 = arith.constant dense<0.000000e+00> : vector<8x512xf32>
    %85 = tpu.matmul %84, %83, %cst_61 {dimension_numbers = #tpu.dot_dimension_numbers<[1], [0], [0], [1], [0, 0, 1, 1], [], []>} : vector<8x48xf32>, vector<48x512xf32>, vector<8x512xf32> -> vector<8x512xf32>
    %c0_62 = arith.constant 0 : index
    %c0_63 = arith.constant 0 : index
    %86 = vector.load %arg7[%c0_62, %c0_63] : memref<8x1xf32, #tpu.memory_space<vmem>>, vector<8x1xf32>
    %87 = vector.broadcast %86 : vector<8x1xf32> to vector<8x512xf32>
    %88 = arith.addf %85, %87 : vector<8x512xf32>
    %89 = arith.addf %88, %1 : vector<8x512xf32>
    %c0_64 = arith.constant 0 : index
    %c0_65 = arith.constant 0 : index
    %c0_66 = arith.constant 0 : index
    %90 = vector.load %arg9[%c0_64, %c0_65, %c0_66] : memref<1x8x512xf32, #tpu.memory_space<vmem>>, vector<1x8x512xf32>
    %91 = vector.shape_cast %90 : vector<1x8x512xf32> to vector<8x512xf32>
    %92 = vector.shape_cast %89 : vector<8x512xf32> to vector<1x8x512xf32>
    tpu.vector_store %arg9[%c0_64, %c0_65, %c0_66], %92 {strides = array<i32>} : memref<1x8x512xf32, #tpu.memory_space<vmem>>, vector<1x8x512xf32>,
    return
  }
  func.func @transform_0(%arg0: i32) -> (i32, i32, i32) {
    %c0_i32 = arith.constant 0 : i32
    %c0_i32_0 = arith.constant 0 : i32
    %c0_i32_1 = arith.constant 0 : i32
    %c0_i32_2 = arith.constant 0 : i32
    return %c0_i32, %c0_i32_0, %c0_i32_1 : i32, i32, i32
  }
  func.func @transform_1(%arg0: i32) -> (i32, i32) {
    %c0_i32 = arith.constant 0 : i32
    %c0_i32_0 = arith.constant 0 : i32
    %c0_i32_1 = arith.constant 0 : i32
    return %c0_i32, %c0_i32_0 : i32, i32
  }
  func.func @transform_2(%arg0: i32) -> (i32, i32) {
    %c0_i32 = arith.constant 0 : i32
    %c0_i32_0 = arith.constant 0 : i32
    %c0_i32_1 = arith.constant 0 : i32
    return %c0_i32, %c0_i32_0 : i32, i32
  }
  func.func @transform_3(%arg0: i32) -> (i32, i32) {
    %c0_i32 = arith.constant 0 : i32
    %c0_i32_0 = arith.constant 0 : i32
    %c0_i32_1 = arith.constant 0 : i32
    return %c0_i32, %c0_i32_0 : i32, i32
  }
  func.func @transform_4(%arg0: i32) -> (i32, i32) {
    %c0_i32 = arith.constant 0 : i32
    %c0_i32_0 = arith.constant 0 : i32
    %c0_i32_1 = arith.constant 0 : i32
    return %c0_i32, %c0_i32_0 : i32, i32
  }
  func.func @transform_5(%arg0: i32) -> (i32, i32) {
    %c0_i32 = arith.constant 0 : i32
    %c0_i32_0 = arith.constant 0 : i32
    %c0_i32_1 = arith.constant 0 : i32
    return %c0_i32, %c0_i32_0 : i32, i32
  }
  func.func @transform_6(%arg0: i32) -> (i32, i32) {
    %c0_i32 = arith.constant 0 : i32
    %c0_i32_0 = arith.constant 0 : i32
    %c0_i32_1 = arith.constant 0 : i32
    return %c0_i32, %c0_i32_0 : i32, i32
  }
  func.func @transform_7(%arg0: i32) -> (i32, i32, i32) {
    %c0_i32 = arith.constant 0 : i32
    %c0_i32_0 = arith.constant 0 : i32
    %c0_i32_1 = arith.constant 0 : i32
    %c0_i32_2 = arith.constant 0 : i32
    return %c0_i32, %c0_i32_0, %c0_i32_1 : i32, i32, i32
  }
  func.func @transform_8(%arg0: i32) -> (i32, i32, i32) {
    %c0_i32 = arith.constant 0 : i32
    %c0_i32_0 = arith.constant 0 : i32
    %c0_i32_1 = arith.constant 0 : i32
    %c0_i32_2 = arith.constant 0 : i32
    return %c0_i32, %c0_i32_0, %c0_i32_1 : i32, i32, i32
  }
}

</mosaic_0001>

<bundles_post_ra>
// kernel: blaze_block_forward.1
= control target key start
LH: loop header
LB: loop body
LE: loop exit
PB: predicated region body
PF: predicated region fallthrough
CT: control target
= control target key end

     0   :  { %v4875_v3 = vmov 0.0   ;;  %vm76_vm0 = vcmask 64512   ;;  %v413_v6 = vlaneseq  ;;  %v2781_v10 = vmov 0   ;;  %s2782_s14 = smov 111   ;;  %s2783_s19 = smov 112   ;;  %s4866_s0 = inlined_call_operand.vmem [shape: f32[1,8,512], index: 0, kind: input, shape index: {}]   ;;  %s4867_s1 = inlined_call_operand.vmem [shape: f32[48,8], index: 1, kind: input, shape index: {}]   ;;  %s4868_s2 = inlined_call_operand.vmem [shape: f32[48,1], index: 2, kind: input, shape index: {}]   ;;  %s4869_s7 = inlined_call_operand.vmem [shape: f32[9,1,512], index: 7, kind: input, shape index: {}]   ;;  %s4870_s3 = inlined_call_operand.vmem [shape: bf16[48,432], index: 3, kind: input, shape index: {}]   ;;  %s4871_s4 = inlined_call_operand.vmem [shape: f32[48,1], index: 4, kind: input, shape index: {}]   ;;  %s4872_s6 = inlined_call_operand.vmem [shape: f32[8,1], index: 6, kind: input, shape index: {}]   ;;  %s4873_s5 = inlined_call_operand.vmem [shape: f32[8,48], index: 5, kind: input, shape index: {}]   ;;  %s4874_s8 = inlined_call_operand.vmem [shape: f32[1,8,512], index: 8, kind: output, shape index: {}]  }
   0x1   :  { %v31_v0 = vld [vmem:[%s4866_s0 + $0x8] sm:$0xff]  ;;  %v33_v1 = vld [vmem:[%s4866_s0 + $0x18] sm:$0xff]  ;;  %v30_v2 = vld [vmem:[%s4866_s0] sm:$0xff]  ;;  %159 = vmatprep.mubr.f32.mxu0 %v4875_v3  ;;  %260 = vmatprep.mubr.f32.mxu1 %v4875_v3  ;;  %s2784_s21 = smov 113   ;;  %s2785_s24 = smov 127   ;;  %vm437_vm1 = vcmask 908288  }
   0x2   :  { %95 = vmatprep.subr.mxu0 %v31_v0  ;;  %196 = vmatprep.subr.mxu1 %v33_v1  ;;  %v32_v4 = vld [vmem:[%s4866_s0 + $0x10] sm:$0xff]  ;;  %v34_v5 = vld [vmem:[%s4867_s1] sm:$0xff]  ;;  %v35_v9 = vld [vmem:[%s4867_s1 + $0x8] sm:$0xff]  ;;  %v414_v11 = vshrl.u32 %v413_v6, 7  ;;  %s2786_s27 = smov 1   ;;  %s2787_s30 = smov 15  }
   0x3   :  { %96 = vmatpush1.msra.mxu0 %v30_v2  ;;  %197 = vmatpush1.msra.mxu1 %v32_v4  ;;  %v42_v7 = vld [vmem:[%s4868_s2 + $0x10] sm:$0xff]  ;;  %v40_v8 = vld [vmem:[%s4868_s2] sm:$0xff]  ;;  %v43_v12 = vld [vmem:[%s4868_s2 + $0x18] sm:$0xff]  ;;  %s2788_s11 = smov 16   ;;  %s2789_s13 = smov 17   ;;  %vm630_vm2 = vcmask 916480  }
   0x4   :  { %2635 = vmatmul.mubr.msk.f32.vlgmr.msra.gmra.mrb[0].mxu0 %vm76_vm0, %v34_v5  ;;  %2641 = vmatmul.mubr.msk.f32.vlgmr.msra.gmra.mrb[0].mxu1 %vm76_vm0, %v34_v5  ;;  %v41_v13 = vld [vmem:[%s4868_s2 + $0x8] sm:$0xff]  ;;  %v36_v14 = vld [vmem:[%s4867_s1 + $0x10] sm:$0xff]  ;;  %v2878_v15 = vsub.s32 1, %v414_v11  ;;  %v2880_v16 = vsub.s32 0, %v414_v11  ;;  %v44_v18 = vld [vmem:[%s4868_s2 + $0x20] sm:$0xff]  ;;  %v2900_v23 = vsub.s32 3, %v414_v11 }
   0x5   :  { %165 = vmatprep.mubr.f32.mxu0 %v4875_v3  ;;  %266 = vmatprep.mubr.f32.mxu1 %v4875_v3  ;;  %v45_v17 = vld [vmem:[%s4868_s2 + $0x28] sm:$0xff]  ;;  %v411_v19 = vld [vmem:[%s4869_s7] sm:$0xf]  ;;  %v37_v20 = vld [vmem:[%s4867_s1 + $0x18] sm:$0xff]  ;;  %v2902_v24 = vsub.s32 2, %v414_v11  ;;  %vm823_vm3 = vcmask 924672  }
   0x6   :  { %2757 = vset.pattern.permute.xlu1 %v2781_v10  ;;  %2756 = vset.pattern.permute.xlu0 %v2781_v10  ;;  %v420_v21 = vrot.slane %v411_v19, %v2878_v15  ;;  %v416_v22 = vrot.slane %v411_v19, %v2880_v16  ;;  %v38_v25 = vld [vmem:[%s4867_s1 + $0x20] sm:$0xff]  ;;  %v428_v26 = vrot.slane %v411_v19, %v2900_v23  ;;  %v39_v29 = vld [vmem:[%s4867_s1 + $0x28] sm:$0xff]  ;;  %v2650_v44 = vld [vmem:[%s4869_s7 + $0x14] sm:$0xf]  ;;  %vm1016_vm4 = vcmask 1039360  }
   0x7   :  { %58 = vperm.xlu1 %2757, %v42_v7   ;;  %48 = vperm.xlu0 %2756, %v40_v8   ;;  %v424_v27 = vrot.slane %v411_v19, %v2902_v24  ;;  %v2647_v28 = vld [vmem:[%s4869_s7 + $0x4] sm:$0xf]  ;;  %v2648_v34 = vld [vmem:[%s4869_s7 + $0x8] sm:$0xf]  ;;  %v2649_v39 = vld [vmem:[%s4869_s7 + $0xc] sm:$0xf]  ;;  %v1216_v45 = vrot.slane %v2650_v44, %v2878_v15  ;;  %v1212_v46 = vrot.slane %v2650_v44, %v2880_v16 }
   0x8   :  { %2636 = vmatmul.mubr.msk.f32.gmra.mrb[2].mxu0 %vm76_vm0, %v35_v9  ;;  %2642 = vmatmul.mubr.msk.f32.gmra.mrb[2].mxu1 %vm76_vm0, %v35_v9  ;;  %v613_v30 = vrot.slane %v2647_v28, %v2878_v15  ;;  %v609_v31 = vrot.slane %v2647_v28, %v2880_v16  ;;  %v621_v32 = vrot.slane %v2647_v28, %v2900_v23  ;;  %v2651_v49 = vld [vmem:[%s4869_s7 + $0x18] sm:$0xf]  ;;  %v2652_v54 = vld [vmem:[%s4869_s7 + $0x1c] sm:$0xf]  ;;  %v2653_v59 = vld [vmem:[%s4869_s7 + $0x20] sm:$0xf] }
   0x9   :  { %171 = vmatprep.mubr.f32.mxu0 %v4875_v3  ;;  %272 = vmatprep.mubr.f32.mxu1 %v4875_v3  ;;  %v617_v33 = vrot.slane %v2647_v28, %v2902_v24  ;;  %v806_v35 = vrot.slane %v2648_v34, %v2878_v15  ;;  %v802_v36 = vrot.slane %v2648_v34, %v2880_v16  ;;  %vm1115_vm5 = vcmask 7168  }
   0xa   :  { %v814_v37 = vrot.slane %v2648_v34, %v2900_v23  ;;  %v810_v38 = vrot.slane %v2648_v34, %v2902_v24  ;;  %v999_v40 = vrot.slane %v2649_v39, %v2878_v15  ;;  %v995_v41 = vrot.slane %v2649_v39, %v2880_v16 }
   0xb   :  { %63 = vperm.xlu1 %2757, %v43_v12   ;;  %53 = vperm.xlu0 %2756, %v41_v13   ;;  %v1007_v42 = vrot.slane %v2649_v39, %v2900_v23  ;;  %v1003_v43 = vrot.slane %v2649_v39, %v2902_v24  ;;  %v1224_v47 = vrot.slane %v2650_v44, %v2900_v23  ;;  %vm922_vm6 = vcmask 121856  }
   0xc   :  { %2637 = vmatmul.mubr.msk.f32.gmra.mrb[4].mxu0 %vm76_vm0, %v36_v14  ;;  %2643 = vmatmul.mubr.msk.f32.gmra.mrb[4].mxu1 %vm76_vm0, %v36_v14  ;;  %v1220_v48 = vrot.slane %v2650_v44, %v2902_v24  ;;  %v1405_v50 = vrot.slane %v2651_v49, %v2880_v16  ;;  %v1409_v51 = vrot.slane %v2651_v49, %v2878_v15  ;;  %vm729_vm7 = vcmask 130048  }
   0xd   :  { %177 = vmatprep.mubr.f32.mxu0 %v4875_v3  ;;  %278 = vmatprep.mubr.f32.mxu1 %v4875_v3  ;;  %v1413_v52 = vrot.slane %v2651_v49, %v2902_v24  ;;  %v1417_v53 = vrot.slane %v2651_v49, %v2900_v23  ;;  %v1602_v55 = vrot.slane %v2652_v54, %v2878_v15  ;;  %vm536_vm8 = vcmask 138240  }
   0xe   :  { %v1598_v56 = vrot.slane %v2652_v54, %v2880_v16  ;;  %v1610_v57 = vrot.slane %v2652_v54, %v2900_v23  ;;  %v1606_v58 = vrot.slane %v2652_v54, %v2902_v24  ;;  %v1791_v60 = vrot.slane %v2653_v59, %v2880_v16 }
   0xf   :  { %73 = vperm.xlu1 %2757, %v45_v17   ;;  %68 = vperm.xlu0 %2756, %v44_v18   ;;  %v1795_v61 = vrot.slane %v2653_v59, %v2878_v15  ;;  %v1799_v62 = vrot.slane %v2653_v59, %v2902_v24  ;;  %v1803_v63 = vrot.slane %v2653_v59, %v2900_v23  ;;  %vm2161_vm9 = vcmask 392192  }
  0x10   :  { %2638 = vmatmul.mubr.msk.f32.gmra.mrb[6].mxu0 %vm76_vm0, %v37_v20  ;;  %2644 = vmatmul.mubr.msk.f32.gmra.mrb[6].mxu1 %vm76_vm0, %v37_v20 }
  0x11   :  { %183 = vmatprep.mubr.f32.mxu0 %v4875_v3  ;;  %284 = vmatprep.mubr.f32.mxu1 %v4875_v3 }
  0x13   :  { %431 = vrot.lane.b32.xlu1 %v420_v21, %s2782_s14  ;;  %429 = vrot.lane.b32.xlu0 %v416_v22, %s2782_s14 }
  0x14   :  { %2639 = vmatmul.mubr.msk.f32.gmra.mrb[8].mxu0 %vm76_vm0, %v38_v25  ;;  %2645 = vmatmul.mubr.msk.f32.gmra.mrb[8].mxu1 %vm76_vm0, %v38_v25 }
  0x15   :  { %189 = vmatprep.mubr.f32.mxu0 %v4875_v3  ;;  %290 = vmatprep.mubr.f32.mxu1 %v4875_v3 }
  0x17   :  { %435 = vrot.lane.b32.xlu1 %v428_v26, %s2782_s14  ;;  %433 = vrot.lane.b32.xlu0 %v424_v27, %s2782_s14 }
  0x18   :  { %2640 = vmatmul.mubr.msk.f32.gmra.mrb[10].mxu0 %vm76_vm0, %v39_v29  ;;  %2646 = vmatmul.mubr.msk.f32.gmra.mrb[10].mxu1 %vm76_vm0, %v39_v29 }
  0x1b   :  { %624 = vrot.lane.b32.xlu1 %v613_v30, %s2783_s19  ;;  %622 = vrot.lane.b32.xlu0 %v609_v31, %s2783_s19 }
  0x1f   :  { %628 = vrot.lane.b32.xlu1 %v621_v32, %s2783_s19  ;;  %626 = vrot.lane.b32.xlu0 %v617_v33, %s2783_s19 }
  0x23   :  { %817 = vrot.lane.b32.xlu1 %v806_v35, %s2784_s21  ;;  %815 = vrot.lane.b32.xlu0 %v802_v36, %s2784_s21 }
  0x27   :  { %821 = vrot.lane.b32.xlu1 %v814_v37, %s2784_s21  ;;  %819 = vrot.lane.b32.xlu0 %v810_v38, %s2784_s21 }
  0x2b   :  { %1010 = vrot.lane.b32.xlu1 %v999_v40, %s2785_s24  ;;  %1008 = vrot.lane.b32.xlu0 %v995_v41, %s2785_s24 }
  0x2f   :  { %1014 = vrot.lane.b32.xlu1 %v1007_v42, %s2785_s24  ;;  %1012 = vrot.lane.b32.xlu0 %v1003_v43, %s2785_s24 }
  0x33   :  { %1227 = vrot.lane.b32.xlu1 %v1216_v45, %s2786_s27  ;;  %1225 = vrot.lane.b32.xlu0 %v1212_v46, %s2786_s27 }
  0x37   :  { %1231 = vrot.lane.b32.xlu1 %v1224_v47, %s2786_s27  ;;  %1229 = vrot.lane.b32.xlu0 %v1220_v48, %s2786_s27 }
  0x3b   :  { %1418 = vrot.lane.b32.xlu1 %v1405_v50, %s2787_s30  ;;  %1420 = vrot.lane.b32.xlu0 %v1409_v51, %s2787_s30 }
  0x3f   :  { %1422 = vrot.lane.b32.xlu1 %v1413_v52, %s2787_s30  ;;  %1424 = vrot.lane.b32.xlu0 %v1417_v53, %s2787_s30 }
  0x43   :  { %1613 = vrot.lane.b32.xlu1 %v1602_v55, %s2788_s11  ;;  %1611 = vrot.lane.b32.xlu0 %v1598_v56, %s2788_s11 }
  0x47   :  { %1617 = vrot.lane.b32.xlu1 %v1610_v57, %s2788_s11  ;;  %1615 = vrot.lane.b32.xlu0 %v1606_v58, %s2788_s11 }
  0x4b   :  { %1804 = vrot.lane.b32.xlu1 %v1791_v60, %s2789_s13  ;;  %1806 = vrot.lane.b32.xlu0 %v1795_v61, %s2789_s13 }
  0x4f   :  { %1808 = vrot.lane.b32.xlu1 %v1799_v62, %s2789_s13  ;;  %1810 = vrot.lane.b32.xlu0 %v1803_v63, %s2789_s13 }
  0x86   :  { %v3003_v0 = vpop.permute.xlu1 %58  ;;  %v3005_v1 = vpop.permute.xlu0 %48 }
  0x8a   :  { %v3007_v2 = vpop.permute.xlu1 %63  ;;  %v3009_v4 = vpop.permute.xlu0 %53 }
  0x8e   :  { %v3011_v5 = vpop.permute.xlu1 %73  ;;  %v3013_v6 = vpop.permute.xlu0 %68 }
  0x92   :  { %v432_v7 = vpop.permute.xlu1 %431  ;;  %v430_v8 = vpop.permute.xlu0 %429 }
  0x93   :  { %v446_v9 = vmul.f32 0.0, %v430_v8  ;;  %v3041_v38 = vsel %vm437_vm1, %v430_v8, %v432_v7 }
  0x95   :  { %v476_v10 = vpack.c.bf16 %v446_v9, %v446_v9 }
  0x96   :  { %v3015_v11 = vpop.permute.xlu1 %435  ;;  %v434_v12 = vpop.permute.xlu0 %433 }
  0x97   :  { %506 = vrot.lane.b32.xlu0 %v476_v10, %s2789_s13  ;;  %516 = vrot.lane.b32.xlu1 %v476_v10, %s2789_s13  ;;  %v3046_v43 = vsel %vm437_vm1, %v432_v7, %v434_v12  ;;  %v3050_v44 = vsel %vm437_vm1, %v434_v12, %v3015_v11 }
  0x9a   :  { %v625_v13 = vpop.permute.xlu1 %624  ;;  %v623_v14 = vpop.permute.xlu0 %622 }
  0x9b   :  { %v639_v15 = vmul.f32 0.0, %v623_v14  ;;  %526 = vrot.lane.b32.xlu0 %v476_v10, %s2789_s13  ;;  %v3055_v47 = vsel %vm630_vm2, %v623_v14, %v625_v13 }
  0x9d   :  { %v669_v16 = vpack.c.bf16 %v639_v15, %v639_v15 }
  0x9e   :  { %v3020_v17 = vpop.permute.xlu1 %628  ;;  %v627_v18 = vpop.permute.xlu0 %626 }
  0x9f   :  { %5014 = vst [vmem:[#allocation4_spill] sm:$0xff] %v3020_v17  ;;  %699 = vrot.lane.b32.xlu1 %v669_v16, %s2788_s11  ;;  %709 = vrot.lane.b32.xlu0 %v669_v16, %s2788_s11  ;;  %v3058_v48 = vsel %vm630_vm2, %v625_v13, %v627_v18  ;;  %v3062_v49 = vsel %vm630_vm2, %v627_v18, %v3020_v17 }
  0xa0   :  { %5015 = vst [vmem:[#allocation5_spill] sm:$0xff] %v3058_v48 }
  0xa2   :  { %v818_v19 = vpop.permute.xlu1 %817  ;;  %v816_v20 = vpop.permute.xlu0 %815 }
  0xa3   :  { %v832_v21 = vmul.f32 0.0, %v816_v20  ;;  %719 = vrot.lane.b32.xlu1 %v669_v16, %s2788_s11  ;;  %v3065_v51 = vsel %vm823_vm3, %v816_v20, %v818_v19 }
  0xa5   :  { %v862_v22 = vpack.c.bf16 %v832_v21, %v832_v21 }
  0xa6   :  { %v3025_v23 = vpop.permute.xlu1 %821  ;;  %v820_v24 = vpop.permute.xlu0 %819 }
  0xa7   :  { %892 = vrot.lane.b32.xlu0 %v862_v22, %s2787_s30  ;;  %902 = vrot.lane.b32.xlu1 %v862_v22, %s2787_s30  ;;  %v3068_v52 = vsel %vm823_vm3, %v818_v19, %v820_v24  ;;  %v3072_v53 = vsel %vm823_vm3, %v820_v24, %v3025_v23 }
  0xaa   :  { %v1011_v25 = vpop.permute.xlu1 %1010  ;;  %v1009_v26 = vpop.permute.xlu0 %1008 }
  0xab   :  { %v1025_v27 = vmul.f32 0.0, %v1009_v26  ;;  %912 = vrot.lane.b32.xlu0 %v862_v22, %s2787_s30  ;;  %v3075_v57 = vsel %vm1016_vm4, %v1009_v26, %v1011_v25 }
  0xad   :  { %v1055_v28 = vpack.c.bf16 %v1025_v27, %v1025_v27 }
  0xae   :  { %v3030_v29 = vpop.permute.xlu1 %1014  ;;  %v1013_v34 = vpop.permute.xlu0 %1012 }
  0xaf   :  { %1085 = vrot.lane.b32.xlu1 %v1055_v28, %s2786_s27  ;;  %1095 = vrot.lane.b32.xlu0 %v1055_v28, %s2786_s27  ;;  %v3084_v9 = vsel %vm1016_vm4, %v1011_v25, %v1013_v34  ;;  %v3088_v10 = vsel %vm1016_vm4, %v1013_v34, %v3030_v29 }
  0xb2   :  { %v1228_v30 = vpop.permute.xlu1 %1227  ;;  %v3038_v35 = vpop.permute.xlu0 %1225 }
  0xb3   :  { %1105 = vrot.lane.b32.xlu1 %v1055_v28, %s2786_s27  ;;  %v3100_v20 = vsel %vm1115_vm5, %v3038_v35, %v1228_v30 }
  0xb4   :  { %5018 = vst [vmem:[#allocation8_spill] sm:$0xff] %v3100_v20 }
  0xb6   :  { %v1232_v31 = vpop.permute.xlu1 %1231  ;;  %v1230_v12 = vpop.permute.xlu0 %1229 }
  0xb7   :  { %v1246_v32 = vmul.f32 0.0, %v1232_v31  ;;  %v3091_v15 = vsel %vm1115_vm5, %v1228_v30, %v1230_v12  ;;  %v3094_v16 = vsel %vm1115_vm5, %v1230_v12, %v1232_v31 }
  0xb9   :  { %v1276_v33 = vpack.c.bf16 %v1246_v32, %v1246_v32 }
  0xbb   :  { %1310 = vrot.lane.b32.xlu1 %v1276_v33, %s2785_s24  ;;  %1320 = vrot.lane.b32.xlu0 %v1276_v33, %s2785_s24 }
  0xbf   :  { %1330 = vrot.lane.b32.xlu1 %v1276_v33, %s2785_s24 }
  0xd7   :  { %v161_v36 = vpop.f32.mrb[0].mxu0  ;;  %v262_v37 = vpop.f32.mrb[0].mxu1 }
  0xd8   :  { %v162_v39 = vadd.f32 %v161_v36, %v3005_v1  ;;  %v263_v40 = vadd.f32 %v262_v37, %v3005_v1  ;;  %v163_v41 = vpop.f32.mrb[1].mxu0  ;;  %v264_v42 = vpop.f32.mrb[1].mxu1 }
  0xd9   :  { %v164_v45 = vadd.f32 %v163_v41, %v3005_v1  ;;  %v265_v46 = vadd.f32 %v264_v42, %v3005_v1 }
  0xda   :  { %v297_v50 = vmax.f32 %v162_v39, 0.0  ;;  %v299_v54 = vmax.f32 %v263_v40, 0.0 }
  0xdb   :  { %v167_v55 = vpop.f32.mrb[2].mxu0  ;;  %v268_v56 = vpop.f32.mrb[2].mxu1  ;;  %v298_v58 = vmax.f32 %v164_v45, 0.0  ;;  %v300_v1 = vmax.f32 %v265_v46, 0.0 }
  0xdc   :  { %v168_v59 = vadd.f32 %v167_v55, %v3009_v4  ;;  %v269_v60 = vadd.f32 %v268_v56, %v3009_v4  ;;  %v169_v61 = vpop.f32.mrb[3].mxu0  ;;  %v270_v62 = vpop.f32.mrb[3].mxu1  ;;  %v3079_v63 = vmin.f32 %v297_v50, 6.0  ;;  %v3096_v18 = vmin.f32 %v299_v54, 6.0 }
  0xdd   :  { %v170_v7 = vadd.f32 %v169_v61, %v3009_v4  ;;  %v271_v8 = vadd.f32 %v270_v62, %v3009_v4  ;;  %v3102_v21 = vmin.f32 %v298_v58, 6.0  ;;  %v3107_v28 = vmin.f32 %v300_v1, 6.0 }
  0xde   :  { %5016 = vst [vmem:[#allocation6_spill] sm:$0xff] %v3079_v63  ;;  %v301_v13 = vmax.f32 %v168_v59, 0.0  ;;  %v303_v14 = vmax.f32 %v269_v60, 0.0  ;;  %5017 = vst [vmem:[#allocation7_spill] sm:$0xff] %v3096_v18  ;;  %v640_v33 = vmul.f32 %v3055_v47, %v3079_v63  ;;  %v447_v36 = vmul.f32 %v3041_v38, %v3079_v63 }
  0xdf   :  { %v173_v19 = vpop.f32.mrb[4].mxu0  ;;  %v274_v4 = vpop.f32.mrb[4].mxu1  ;;  %5019 = vst [vmem:[#allocation9_spill] sm:$0xff] %v3102_v21  ;;  %v302_v24 = vmax.f32 %v170_v7, 0.0  ;;  %5021 = vst [vmem:[#allocation11_spill] sm:$0xff] %v3107_v28  ;;  %v304_v32 = vmax.f32 %v271_v8, 0.0  ;;  %v642_v46 = vmul.f32 %v3062_v49, %v3096_v18  ;;  %v449_v59 = vmul.f32 %v3050_v44, %v3096_v18 }
  0xe0   :  { %v3104_v22 = vmin.f32 %v301_v13, 6.0  ;;  %v174_v25 = vadd.f32 %v173_v19, %v3003_v0  ;;  %v175_v26 = vpop.f32.mrb[5].mxu0  ;;  %v276_v27 = vpop.f32.mrb[5].mxu1  ;;  %v3109_v31 = vmin.f32 %v303_v14, 6.0  ;;  %v275_v30 = vadd.f32 %v274_v4, %v3003_v0 }
  0xe1   :  { %v176_v40 = vadd.f32 %v175_v26, %v3003_v0  ;;  %v277_v41 = vadd.f32 %v276_v27, %v3003_v0  ;;  %v3124_v50 = vmin.f32 %v302_v24, 6.0  ;;  %v3130_v60 = vmin.f32 %v304_v32, 6.0 }
  0xe2   :  { %5020 = vst [vmem:[#allocation10_spill] sm:$0xff] %v3104_v22  ;;  %5022 = vst [vmem:[#allocation12_spill] sm:$0xff] %v3109_v31  ;;  %v645_v34 = vmul.f32 %v3055_v47, %v3104_v22  ;;  %v452_v37 = vmul.f32 %v3041_v38, %v3104_v22  ;;  %v305_v39 = vmax.f32 %v174_v25, 0.0  ;;  %v647_v62 = vmul.f32 %v3062_v49, %v3109_v31 }
  0xe3   :  { %v179_v42 = vpop.f32.mrb[6].mxu0  ;;  %v280_v45 = vpop.f32.mrb[6].mxu1  ;;  %5023 = vst [vmem:[#allocation13_spill] sm:$0xff] %v3124_v50  ;;  %5024 = vst [vmem:[#allocation14_spill] sm:$0xff] %v3130_v60  ;;  %v307_v1 = vmax.f32 %v275_v30, 0.0  ;;  %v454_v12 = vmul.f32 %v3050_v44, %v3109_v31  ;;  %v306_v14 = vmax.f32 %v176_v40, 0.0 }
  0xe4   :  { %v180_v54 = vadd.f32 %v179_v42, %v3007_v2  ;;  %v281_v55 = vadd.f32 %v280_v45, %v3007_v2  ;;  %v181_v56 = vpop.f32.mrb[7].mxu0  ;;  %v282_v58 = vpop.f32.mrb[7].mxu1  ;;  %v670_v7 = vpack.c.bf16 %v645_v34, %v640_v33  ;;  %v477_v8 = vpack.c.bf16 %v452_v37, %v447_v36 }
  0xe5   :  { %v182_v0 = vadd.f32 %v181_v56, %v3007_v2  ;;  %v283_v61 = vadd.f32 %v282_v58, %v3007_v2  ;;  %v3138_v13 = vmin.f32 %v305_v39, 6.0  ;;  %v308_v19 = vmax.f32 %v277_v41, 0.0 }
  0xe6   :  { %v309_v4 = vmax.f32 %v180_v54, 0.0  ;;  %v311_v26 = vmax.f32 %v281_v55, 0.0  ;;  %701 = vrot.lane.b32.xlu1 %v670_v7, %s2788_s11  ;;  %508 = vrot.lane.b32.xlu0 %v477_v8, %s2789_s13  ;;  %v672_v39 = vpack.c.bf16 %v647_v62, %v642_v46  ;;  %v479_v42 = vpack.c.bf16 %v454_v12, %v449_v59 }
  0xe7   :  { %5025 = vst [vmem:[#allocation15_spill] sm:$0xff] %v3138_v13  ;;  %v185_v24 = vpop.f32.mrb[8].mxu0  ;;  %v286_v25 = vpop.f32.mrb[8].mxu1  ;;  %v310_v27 = vmax.f32 %v182_v0, 0.0  ;;  %v312_v34 = vmax.f32 %v283_v61, 0.0  ;;  %v1031_v45 = vmul.f32 %v3075_v57, %v3104_v22  ;;  %v3148_v54 = vmin.f32 %v307_v1, 6.0 }
  0xe8   :  { %v186_v2 = vadd.f32 %v185_v24, %v3013_v6  ;;  %v287_v32 = vadd.f32 %v286_v25, %v3013_v6  ;;  %v187_v33 = vpop.f32.mrb[9].mxu0  ;;  %v288_v30 = vpop.f32.mrb[9].mxu1  ;;  %v3150_v55 = vmin.f32 %v306_v14, 6.0  ;;  %v3152_v56 = vmin.f32 %v308_v19, 6.0 }
  0xe9   :  { %v188_v36 = vadd.f32 %v187_v33, %v3013_v6  ;;  %v289_v37 = vadd.f32 %v288_v30, %v3013_v6  ;;  %5026 = vst [vmem:[#allocation16_spill] sm:$0xff] %v3148_v54  ;;  %v838_v61 = vmul.f32 %v3065_v51, %v3104_v22  ;;  %v1026_v62 = vmul.f32 %v3075_v57, %v3079_v63 }
  0xea   :  { %v313_v40 = vmax.f32 %v186_v2, 0.0  ;;  %v315_v41 = vmax.f32 %v287_v32, 0.0  ;;  %5027 = vst [vmem:[#allocation17_spill] sm:$0xff] %v3150_v55  ;;  %5028 = vst [vmem:[#allocation18_spill] sm:$0xff] %v3152_v56  ;;  %705 = vrot.lane.b32.xlu1 %v672_v39, %s2788_s11  ;;  %512 = vrot.lane.b32.xlu0 %v479_v42, %s2789_s13  ;;  %v833_v1 = vmul.f32 %v3065_v51, %v3079_v63  ;;  %v3162_v8 = vmin.f32 %v309_v4, 6.0 }
  0xeb   :  { %v191_v58 = vpop.f32.mrb[10].mxu0  ;;  %v292_v0 = vpop.f32.mrb[10].mxu1  ;;  %v314_v7 = vmax.f32 %v188_v36, 0.0  ;;  %v316_v6 = vmax.f32 %v289_v37, 0.0  ;;  %v3164_v12 = vmin.f32 %v311_v26, 6.0  ;;  %v3166_v14 = vmin.f32 %v310_v27, 6.0 }
  0xec   :  { %v193_v46 = vpop.f32.mrb[11].mxu0  ;;  %v294_v59 = vpop.f32.mrb[11].mxu1  ;;  %5029 = vst [vmem:[#allocation19_spill] sm:$0xff] %v3162_v8  ;;  %v3168_v19 = vmin.f32 %v312_v34, 6.0  ;;  %v3170_v24 = vmin.f32 %v313_v40, 6.0  ;;  %v3172_v25 = vmin.f32 %v315_v41, 6.0  ;;  %v1056_v2 = vpack.c.bf16 %v1031_v45, %v1026_v62 }
  0xed   :  { %5030 = vst [vmem:[#allocation20_spill] sm:$0xff] %v3164_v12  ;;  %5031 = vst [vmem:[#allocation21_spill] sm:$0xff] %v3166_v14  ;;  %v863_v32 = vpack.c.bf16 %v838_v61, %v833_v1  ;;  %v3175_v33 = vadd.f32 %v191_v58, %v3011_v5  ;;  %v3178_v30 = vadd.f32 %v292_v0, %v3011_v5  ;;  %v3184_v27 = vmin.f32 %v314_v7, 6.0 }
  0xee   :  { %5032 = vst [vmem:[#allocation22_spill] sm:$0xff] %v3168_v19  ;;  %5033 = vst [vmem:[#allocation23_spill] sm:$0xff] %v3170_v24  ;;  %v1028_v4 = vmul.f32 %v3088_v10, %v3096_v18  ;;  %v1033_v26 = vmul.f32 %v3088_v10, %v3109_v31  ;;  %v3186_v34 = vmin.f32 %v316_v6, 6.0  ;;  %1087 = vrot.lane.b32.xlu1 %v1056_v2, %s2786_s27 }
  0xef   :  { %5034 = vst [vmem:[#allocation24_spill] sm:$0xff] %v3172_v25  ;;  %5035 = vst [vmem:[#allocation25_spill] sm:$0xff] %v3184_v27  ;;  %894 = vrot.lane.b32.xlu0 %v863_v32, %s2787_s30  ;;  %v835_v36 = vmul.f32 %v3072_v53, %v3096_v18  ;;  %v840_v37 = vmul.f32 %v3072_v53, %v3109_v31  ;;  %v3195_v39 = vadd.f32 %v193_v46, %v3011_v5 }
  0xf0   :  { %5036 = vst [vmem:[#allocation26_spill] sm:$0xff] %v3186_v34  ;;  %v3198_v40 = vadd.f32 %v294_v59, %v3011_v5  ;;  %v1058_v41 = vpack.c.bf16 %v1033_v26, %v1028_v4  ;;  %v1244_v42 = vmul.f32 %v3091_v15, %v3096_v18  ;;  %v1249_v58 = vmul.f32 %v3091_v15, %v3109_v31 }
  0xf1   :  { %v865_v45 = vpack.c.bf16 %v840_v37, %v835_v36  ;;  %v1242_v0 = vmul.f32 %v3038_v35, %v3079_v63  ;;  %v1247_v61 = vmul.f32 %v3038_v35, %v3104_v22  ;;  %v448_v7 = vmul.f32 %v3046_v43, %v3102_v21 }
  0xf2   :  { %v453_v5 = vmul.f32 %v3046_v43, %v3124_v50  ;;  %v641_v6 = vmul.f32 %v3058_v48, %v3102_v21  ;;  %v646_v46 = vmul.f32 %v3058_v48, %v3124_v50  ;;  %1091 = vrot.lane.b32.xlu1 %v1058_v41, %s2786_s27  ;;  %v1274_v62 = vpack.c.bf16 %v1249_v58, %v1244_v42 }
  0xf3   :  { %898 = vrot.lane.b32.xlu0 %v865_v45, %s2787_s30  ;;  %v1272_v1 = vpack.c.bf16 %v1247_v61, %v1242_v0  ;;  %v450_v2 = vmul.f32 %v3015_v11, %v3107_v28  ;;  %v455_v26 = vmul.f32 %v3015_v11, %v3130_v60  ;;  %v643_v36 = vmul.f32 %v3020_v17, %v3107_v28 }
  0xf4   :  { %v478_v32 = vpack.c.bf16 %v453_v5, %v448_v7  ;;  %v671_v4 = vpack.c.bf16 %v646_v46, %v641_v6  ;;  %v648_v37 = vmul.f32 %v3020_v17, %v3130_v60  ;;  %v834_v41 = vmul.f32 %v3068_v52, %v3102_v21 }
  0xf5   :  { %v839_v42 = vmul.f32 %v3068_v52, %v3124_v50  ;;  %v1027_v45 = vmul.f32 %v3084_v9, %v3102_v21  ;;  %v480_v58 = vpack.c.bf16 %v455_v26, %v450_v2  ;;  %v1032_v0 = vmul.f32 %v3084_v9, %v3124_v50 }
  0xf6   :  { %v3237_v61 = vmul.f32 %v3025_v23, %v3107_v28  ;;  %v3241_v7 = vmul.f32 %v3025_v23, %v3130_v60  ;;  %1306 = vrot.lane.b32.xlu1 %v1274_v62, %s2785_s24  ;;  %v673_v6 = vpack.c.bf16 %v648_v37, %v643_v36  ;;  %v3248_v2 = vmul.f32 %v3030_v29, %v3107_v28 }
  0xf7   :  { %1302 = vrot.lane.b32.xlu0 %v1272_v1, %s2785_s24  ;;  %v864_v46 = vpack.c.bf16 %v839_v42, %v834_v41  ;;  %v1057_v26 = vpack.c.bf16 %v1032_v0, %v1027_v45  ;;  %v3254_v59 = vmul.f32 %v3030_v29, %v3130_v60  ;;  %v3258_v5 = vmul.f32 %v3041_v38, %v3138_v13 }
  0xf8   :  { %v3262_v62 = vmul.f32 %v3041_v38, %v3162_v8  ;;  %v3266_v1 = vmul.f32 %v3100_v20, %v3102_v21  ;;  %v3270_v36 = vmul.f32 %v3100_v20, %v3124_v50  ;;  %v3274_v37 = vmul.f32 %v3050_v44, %v3148_v54 }
  0xf9   :  { %v1059_v41 = vpack.c.bf16 %v3254_v59, %v3248_v2  ;;  %v3280_v42 = vmul.f32 %v3050_v44, %v3164_v12  ;;  %v3284_v45 = vmul.f32 %v3094_v16, %v3107_v28  ;;  %v3288_v0 = vmul.f32 %v3094_v16, %v3130_v60 }
  0xfa   :  { %510 = vrot.lane.b32.xlu1 %v478_v32, %s2789_s13  ;;  %v3299_v63 = vmul.f32 %v3065_v51, %v3138_v13  ;;  %v3307_v32 = vmul.f32 %v3065_v51, %v3162_v8  ;;  %v3315_v2 = vmul.f32 %v3055_v47, %v3162_v8  ;;  %v3319_v59 = vmul.f32 %v3072_v53, %v3148_v54 }
  0xfb   :  { %703 = vrot.lane.b32.xlu0 %v671_v4, %s2788_s11  ;;  %v3311_v4 = vmul.f32 %v3055_v47, %v3138_v13  ;;  %v3323_v22 = vmul.f32 %v3072_v53, %v3164_v12  ;;  %v3327_v3 = vmul.f32 %v3062_v49, %v3148_v54  ;;  %v3333_v60 = vmul.f32 %v3062_v49, %v3164_v12 }
  0xfc   :  { %5037 = vst [vmem:[#allocation27_spill] sm:$0xff] %v3299_v63  ;;  %v3337_v21 = vmul.f32 %v3038_v35, %v3138_v13  ;;  %v3341_v50 = vmul.f32 %v3038_v35, %v3162_v8  ;;  %v3352_v34 = vmul.f32 %v3075_v57, %v3138_v13  ;;  %v3368_v31 = vmul.f32 %v3058_v48, %v3166_v14 }
  0xfd   :  { %5038 = vst [vmem:[#allocation28_spill] sm:$0xff] %v3327_v3  ;;  %v3372_v28 = vmul.f32 %v3088_v10, %v3148_v54  ;;  %v3376_v63 = vmul.f32 %v3088_v10, %v3164_v12  ;;  %v3380_v18 = vmul.f32 %v3020_v17, %v3152_v56  ;;  %v3386_v13 = vmul.f32 %v3020_v17, %v3168_v19 }
  0xfe   :  { %5039 = vst [vmem:[#allocation29_spill] sm:$0xff] %v3337_v21  ;;  %5040 = vst [vmem:[#allocation30_spill] sm:$0xff] %v3341_v50  ;;  %514 = vrot.lane.b32.xlu1 %v480_v58, %s2789_s13  ;;  %v3360_v58 = vmul.f32 %v3075_v57, %v3162_v8  ;;  %v3390_v21 = vmul.f32 %v3091_v15, %v3148_v54  ;;  %v3394_v50 = vmul.f32 %v3091_v15, %v3164_v12 }
  0xff   :  { %707 = vrot.lane.b32.xlu0 %v673_v6, %s2788_s11  ;;  %5041 = vst [vmem:[#allocation31_spill] sm:$0xff] %v3352_v34  ;;  %v3364_v6 = vmul.f32 %v3058_v48, %v3150_v55  ;;  %5043 = vst [vmem:[#allocation33_spill] sm:$0xff] %v3372_v28  ;;  %v5048_v48 = vmax.f32 %v3175_v33, 0.0  ;;  %v3416_v33 = vmul.f32 %v3084_v9, %v3166_v14 }
 0x100   :  { %5042 = vst [vmem:[#allocation32_spill] sm:$0xff] %v3360_v58  ;;  %5044 = vst [vmem:[#allocation34_spill] sm:$0xff] %v3380_v18  ;;  %v3408_v58 = vmul.f32 %v3084_v9, %v3150_v55  ;;  %v3428_v34 = vmul.f32 %v3030_v29, %v3152_v56  ;;  %v3432_v17 = vmul.f32 %v3030_v29, %v3168_v19 }
 0x101   :  { %5045 = vst [vmem:[#allocation35_spill] sm:$0xff] %v3386_v13  ;;  %5046 = vst [vmem:[#allocation36_spill] sm:$0xff] %v3390_v21  ;;  %v3398_v3 = vmin.f32 %v5048_v48, 6.0  ;;  %v3436_v48 = vmul.f32 %v3015_v11, %v3152_v56  ;;  %v3442_v21 = vmul.f32 %v3015_v11, %v3168_v19  ;;  %v3450_v18 = vmul.f32 %v3100_v20, %v3166_v14 }
 0x102   :  { %5047 = vst [vmem:[#allocation37_spill] sm:$0xff] %v3394_v50  ;;  %896 = vrot.lane.b32.xlu1 %v864_v46, %s2787_s30  ;;  %5050 = vst [vmem:[#allocation39_spill] sm:$0xff] %v3408_v58  ;;  %v3420_v46 = vmul.f32 %v3046_v43, %v3150_v55  ;;  %v3446_v50 = vmul.f32 %v3100_v20, %v3150_v55  ;;  %v5057_v13 = vmax.f32 %v3178_v30, 0.0 }
 0x103   :  { %5049 = vst [vmem:[#allocation38_spill] sm:$0xff] %v3398_v3  ;;  %1089 = vrot.lane.b32.xlu0 %v1057_v26, %s2786_s27  ;;  %5051 = vst [vmem:[#allocation40_spill] sm:$0xff] %v3416_v33  ;;  %v3424_v26 = vmul.f32 %v3046_v43, %v3166_v14  ;;  %v5059_v8 = vpack.c.bf16 %v3241_v7, %v3237_v61  ;;  %v3467_v20 = vmul.f32 %v3068_v52, %v3150_v55  ;;  %v3481_v7 = vpop.permute.xlu1 %1418 }
 0x104   :  { %5052 = vst [vmem:[#allocation41_spill] sm:$0xff] %v3428_v34  ;;  %5053 = vst [vmem:[#allocation42_spill] sm:$0xff] %v3436_v48  ;;  %v3454_v28 = vmin.f32 %v5057_v13, 6.0  ;;  %v3479_v61 = vmul.f32 %v3094_v16, %v3152_v56  ;;  %v3489_v13 = vmul.f32 %v3025_v23, %v3152_v56  ;;  %v3493_v30 = vmul.f32 %v3025_v23, %v3168_v19 }
 0x105   :  { %5054 = vst [vmem:[#allocation43_spill] sm:$0xff] %v3442_v21  ;;  %5055 = vst [vmem:[#allocation44_spill] sm:$0xff] %v3446_v50  ;;  %v3497_v33 = vmul.f32 %v3055_v47, %v3170_v24  ;;  %v3503_v50 = vmul.f32 %v3055_v47, %v3398_v3  ;;  %v3511_v48 = vmul.f32 %v3041_v38, %v3398_v3  ;;  %v5063_v21 = vmax.f32 %v3195_v39, 0.0 }
 0x106   :  { %5056 = vst [vmem:[#allocation45_spill] sm:$0xff] %v3450_v18  ;;  %5058 = vst [vmem:[#allocation46_spill] sm:$0xff] %v3454_v28  ;;  %900 = vrot.lane.b32.xlu1 %v5059_v8, %s2787_s30  ;;  %v3475_v8 = vmul.f32 %v3068_v52, %v3166_v14  ;;  %v3507_v18 = vmul.f32 %v3041_v38, %v3170_v24  ;;  %v5065_v58 = vpack.c.bf16 %v3262_v62, %v3258_v5  ;;  %v1421_v5 = vpop.permute.xlu0 %1420 }
 0x107   :  { %1093 = vrot.lane.b32.xlu0 %v1059_v41, %s2786_s27  ;;  %5060 = vst [vmem:[#allocation47_spill] sm:$0xff] %v3467_v20  ;;  %v3485_v41 = vmul.f32 %v3094_v16, %v3168_v19  ;;  %5062 = vst [vmem:[#allocation49_spill] sm:$0xff] %v3511_v48  ;;  %v3515_v34 = vmin.f32 %v5063_v21, 6.0  ;;  %v5066_v47 = vpack.c.bf16 %v3270_v36, %v3266_v1  ;;  %v1423_v20 = vpop.permute.xlu1 %1422 }
 0x108   :  { %5061 = vst [vmem:[#allocation48_spill] sm:$0xff] %v3507_v18  ;;  %v3531_v21 = vmul.f32 %v3062_v49, %v3172_v25  ;;  %v3539_v62 = vmul.f32 %v3062_v49, %v3454_v28  ;;  %v3543_v1 = vmul.f32 %v3050_v44, %v3172_v25  ;;  %v3547_v36 = vmul.f32 %v3050_v44, %v3454_v28 }
 0x109   :  { %5064 = vst [vmem:[#allocation50_spill] sm:$0xff] %v3515_v34  ;;  %v3559_v49 = vmul.f32 %v3065_v51, %v3170_v24  ;;  %v3565_v44 = vmul.f32 %v3065_v51, %v3398_v3  ;;  %v3569_v38 = vmul.f32 %v3088_v10, %v3172_v25  ;;  %v5070_v18 = vmax.f32 %v3198_v40, 0.0 }
 0x10a   :  { %518 = vrot.lane.b32.xlu1 %v5065_v58, %s2789_s13  ;;  %5067 = vst [vmem:[#allocation51_spill] sm:$0xff] %v3531_v21  ;;  %v3551_v58 = vmul.f32 %v3075_v57, %v3170_v24  ;;  %v5072_v39 = vpack.c.bf16 %v3280_v42, %v3274_v37  ;;  %v5073_v51 = vpack.c.bf16 %v3288_v0, %v3284_v45  ;;  %v5103_v21 = vld [vmem:[#allocation30_spill] sm:$0xff] }
 0x10b   :  { %1304 = vrot.lane.b32.xlu0 %v5066_v47, %s2785_s24  ;;  %v3555_v47 = vmul.f32 %v3075_v57, %v3398_v3  ;;  %5068 = vst [vmem:[#allocation52_spill] sm:$0xff] %v3569_v38  ;;  %v3573_v57 = vmul.f32 %v3088_v10, %v3454_v28  ;;  %v3577_v48 = vmin.f32 %v5070_v18, 6.0  ;;  %v3593_v18 = vmul.f32 %v3072_v53, %v3172_v25 }
 0x10c   :  { %v3601_v42 = vmul.f32 %v3072_v53, %v3454_v28  ;;  %v3605_v45 = vmul.f32 %v3091_v15, %v3172_v25  ;;  %v3609_v0 = vmul.f32 %v3091_v15, %v3454_v28  ;;  %v3621_v53 = vmul.f32 %v3046_v43, %v3184_v27  ;;  %v5082_v15 = vld [vmem:[#allocation27_spill] sm:$0xff] }
 0x10d   :  { %5069 = vst [vmem:[#allocation53_spill] sm:$0xff] %v3573_v57  ;;  %5071 = vst [vmem:[#allocation54_spill] sm:$0xff] %v3577_v48  ;;  %v3627_v40 = vmul.f32 %v3046_v43, %v3515_v34  ;;  %v5083_v10 = vpack.c.bf16 %v3307_v32, %v5082_v15  ;;  %v3643_v43 = vsel %vm922_vm6, %v3481_v7, %v1421_v5 }
 0x10e   :  { %522 = vrot.lane.b32.xlu1 %v5072_v39, %s2789_s13  ;;  %5074 = vst [vmem:[#allocation55_spill] sm:$0xff] %v3593_v18  ;;  %5075 = vst [vmem:[#allocation56_spill] sm:$0xff] %v3601_v42  ;;  %v3613_v39 = vmul.f32 %v3038_v35, %v3170_v24  ;;  %v3645_v18 = vpop.permute.xlu0 %1424  ;;  %v3665_v37 = vmul.f32 %v3643_v43, %v3150_v55  ;;  %v3669_v32 = vmul.f32 %v3643_v43, %v3166_v14  ;;  %v5109_v42 = vld [vmem:[#allocation15_spill] sm:$0xff] }
 0x10f   :  { %1308 = vrot.lane.b32.xlu0 %v5073_v51, %s2785_s24  ;;  %5076 = vst [vmem:[#allocation57_spill] sm:$0xff] %v3605_v45  ;;  %5077 = vst [vmem:[#allocation58_spill] sm:$0xff] %v3609_v0  ;;  %v3617_v51 = vmul.f32 %v3038_v35, %v3398_v3  ;;  %v5084_v35 = vpack.c.bf16 %v3315_v2, %v3311_v4  ;;  %v3655_v2 = vmul.f32 %v3015_v11, %v3577_v48 }
 0x110   :  { %5078 = vst [vmem:[#allocation59_spill] sm:$0xff] %v3613_v39  ;;  %5080 = vst [vmem:[#allocation61_spill] sm:$0xff] %v3621_v53  ;;  %v3659_v4 = vsel %vm922_vm6, %v1423_v20, %v3645_v18  ;;  %v3746_v38 = vmul.f32 %v3481_v7, %v5109_v42  ;;  %v3770_v57 = vmul.f32 %v3084_v9, %v3515_v34 }
 0x111   :  { %5079 = vst [vmem:[#allocation60_spill] sm:$0xff] %v3617_v51  ;;  %5081 = vst [vmem:[#allocation62_spill] sm:$0xff] %v3627_v40  ;;  %v3679_v53 = vmul.f32 %v3659_v4, %v3168_v19  ;;  %v5093_v40 = vpack.c.bf16 %v3323_v22, %v3319_v59  ;;  %v5096_v51 = vld [vmem:[#allocation5_spill] sm:$0xff]  ;;  %v3780_v0 = vmul.f32 %v3030_v29, %v3577_v48 }
 0x112   :  { %904 = vrot.lane.b32.xlu1 %v5083_v10, %s2787_s30  ;;  %5085 = vst [vmem:[#allocation27_spill] sm:$0xff] %v3645_v18  ;;  %v5086_v10 = vld [vmem:[#allocation26_spill] sm:$0xff]  ;;  %5088 = vst [vmem:[#allocation64_spill] sm:$0xff] %v3655_v2  ;;  %v5094_v18 = vld [vmem:[#allocation28_spill] sm:$0xff]  ;;  %v3698_v45 = vmul.f32 %v5096_v51, %v3184_v27  ;;  %v3702_v22 = vmul.f32 %v5096_v51, %v3515_v34  ;;  %v3728_v51 = vpop.permute.xlu0 %1611 }
 0x113   :  { %711 = vrot.lane.b32.xlu0 %v5084_v35, %s2788_s11  ;;  %v3651_v15 = vmul.f32 %v3015_v11, %v5086_v10  ;;  %v3661_v35 = vpop.permute.xlu1 %1613  ;;  %5089 = vst [vmem:[#allocation65_spill] sm:$0xff] %v3665_v37  ;;  %5090 = vst [vmem:[#allocation66_spill] sm:$0xff] %v3669_v32  ;;  %v3675_v11 = vmul.f32 %v3659_v4, %v3152_v56  ;;  %v5095_v39 = vpack.c.bf16 %v3333_v60, %v5094_v18  ;;  %v5107_v37 = vld [vmem:[#allocation31_spill] sm:$0xff] }
 0x114   :  { %5092 = vst [vmem:[#allocation68_spill] sm:$0xff] %v3679_v53  ;;  %5110 = vst [vmem:[#allocation30_spill] sm:$0xff] %v3746_v38 }
 0x115   :  { %5087 = vst [vmem:[#allocation63_spill] sm:$0xff] %v3651_v15  ;;  %5091 = vst [vmem:[#allocation67_spill] sm:$0xff] %v3675_v11  ;;  %v3692_v15 = vsel %vm922_vm6, %v1421_v5, %v1423_v20  ;;  %v5097_v20 = vld [vmem:[#allocation4_spill] sm:$0xff]  ;;  %v5104_v11 = vld [vmem:[#allocation29_spill] sm:$0xff] }
 0x116   :  { %908 = vrot.lane.b32.xlu1 %v5093_v40, %s2787_s30  ;;  %v3706_v60 = vmul.f32 %v3692_v15, %v3148_v54  ;;  %v3710_v59 = vmul.f32 %v3692_v15, %v3164_v12  ;;  %v3714_v5 = vmul.f32 %v5097_v20, %v5086_v10  ;;  %v3718_v18 = vmul.f32 %v5097_v20, %v3577_v48  ;;  %v5106_v20 = vld [vmem:[#allocation32_spill] sm:$0xff] }
 0x117   :  { %715 = vrot.lane.b32.xlu0 %v5095_v39, %s2788_s11  ;;  %v3722_v40 = vmul.f32 %v3068_v52, %v3184_v27  ;;  %v3726_v39 = vmul.f32 %v3068_v52, %v3515_v34  ;;  %v3730_v2 = vpop.permute.xlu1 %1617  ;;  %v5105_v53 = vpack.c.bf16 %v5103_v21, %v5104_v11  ;;  %v5108_v32 = vpack.c.bf16 %v5106_v20, %v5107_v37  ;;  %v5122_v52 = vld [vmem:[#allocation33_spill] sm:$0xff] }
 0x118   :  { %5098 = vst [vmem:[#allocation28_spill] sm:$0xff] %v3714_v5  ;;  %5099 = vst [vmem:[#allocation5_spill] sm:$0xff] %v3718_v18  ;;  %v3762_v11 = vmul.f32 %v3025_v23, %v3577_v48  ;;  %v3766_v20 = vmul.f32 %v3084_v9, %v3184_v27  ;;  %v3774_v21 = vmul.f32 %v3030_v29, %v5086_v10 }
 0x119   :  { %5100 = vst [vmem:[#allocation4_spill] sm:$0xff] %v3722_v40  ;;  %5101 = vst [vmem:[#allocation69_spill] sm:$0xff] %v3726_v39  ;;  %v3788_v40 = vmul.f32 %v3643_v43, %v3515_v34  ;;  %v5121_v9 = vpack.c.bf16 %v3368_v31, %v3364_v6  ;;  %v5123_v38 = vpack.c.bf16 %v3376_v63, %v5122_v52  ;;  %v5124_v39 = vld [vmem:[#allocation8_spill] sm:$0xff] }
 0x11a   :  { %5102 = vst [vmem:[#allocation70_spill] sm:$0xff] %v3730_v2  ;;  %1312 = vrot.lane.b32.xlu1 %v5105_v53, %s2785_s24  ;;  %v5111_v53 = vld [vmem:[#allocation19_spill] sm:$0xff]  ;;  %5114 = vst [vmem:[#allocation31_spill] sm:$0xff] %v3762_v11  ;;  %v3804_v5 = vmul.f32 %v5124_v39, %v3184_v27  ;;  %v3812_v63 = vmul.f32 %v5124_v39, %v3515_v34  ;;  %v3816_v6 = vmul.f32 %v3659_v4, %v5086_v10 }
 0x11b   :  { %1097 = vrot.lane.b32.xlu0 %v5108_v32, %s2786_s27  ;;  %v3754_v37 = vmul.f32 %v3481_v7, %v5111_v53  ;;  %v3758_v32 = vmul.f32 %v3025_v23, %v5086_v10  ;;  %5115 = vst [vmem:[#allocation71_spill] sm:$0xff] %v3766_v20  ;;  %5116 = vst [vmem:[#allocation72_spill] sm:$0xff] %v3770_v57  ;;  %v3784_v23 = vmul.f32 %v3643_v43, %v3184_v27  ;;  %v3818_v52 = vpop.permute.xlu1 %1804  ;;  %v5135_v20 = vld [vmem:[#allocation37_spill] sm:$0xff]  ;;  %v5143_v57 = vld [vmem:[#allocation40_spill] sm:$0xff] }
 0x11c   :  { %5117 = vst [vmem:[#allocation73_spill] sm:$0xff] %v3774_v21  ;;  %5118 = vst [vmem:[#allocation74_spill] sm:$0xff] %v3780_v0  ;;  %v3826_v18 = vmul.f32 %v3094_v16, %v5086_v10  ;;  %v3830_v31 = vmul.f32 %v3094_v16, %v3577_v48  ;;  %v3834_v39 = vmul.f32 %v3481_v7, %v3170_v24  ;;  %v5132_v16 = vld [vmem:[#allocation35_spill] sm:$0xff]  ;;  %v5133_v21 = vld [vmem:[#allocation34_spill] sm:$0xff] }
 0x11d   :  { %5112 = vst [vmem:[#allocation29_spill] sm:$0xff] %v3754_v37  ;;  %5113 = vst [vmem:[#allocation32_spill] sm:$0xff] %v3758_v32  ;;  %v3840_v29 = vmul.f32 %v3481_v7, %v3398_v3  ;;  %v5134_v0 = vpack.c.bf16 %v5132_v16, %v5133_v21  ;;  %v5136_v37 = vld [vmem:[#allocation36_spill] sm:$0xff] }
 0x11e   :  { %5119 = vst [vmem:[#allocation75_spill] sm:$0xff] %v3784_v23  ;;  %5120 = vst [vmem:[#allocation76_spill] sm:$0xff] %v3788_v40  ;;  %713 = vrot.lane.b32.xlu1 %v5121_v9, %s2788_s11  ;;  %v3822_v9 = vmul.f32 %v3659_v4, %v3577_v48  ;;  %v3844_v23 = vmul.f32 %v3692_v15, %v3172_v25  ;;  %v3848_v40 = vmul.f32 %v3692_v15, %v3454_v28 }
 0x11f   :  { %1101 = vrot.lane.b32.xlu0 %v5123_v38, %s2786_s27  ;;  %5125 = vst [vmem:[#allocation33_spill] sm:$0xff] %v3804_v5  ;;  %5126 = vst [vmem:[#allocation8_spill] sm:$0xff] %v3812_v63  ;;  %v1616_v38 = vpop.permute.xlu0 %1615  ;;  %v5137_v5 = vpack.c.bf16 %v5135_v20, %v5136_v37  ;;  %v1809_v32 = vpop.permute.xlu1 %1808  ;;  %v5144_v63 = vld [vmem:[#allocation39_spill] sm:$0xff] }
 0x120   :  { %5127 = vst [vmem:[#allocation77_spill] sm:$0xff] %v3826_v18  ;;  %5128 = vst [vmem:[#allocation78_spill] sm:$0xff] %v3834_v39  ;;  %v3903_v39 = vsel %vm729_vm7, %v3661_v35, %v1616_v38  ;;  %v3909_v18 = vmul.f32 %v3728_v51, %v5109_v42 }
 0x121   :  { %5129 = vst [vmem:[#allocation79_spill] sm:$0xff] %v3840_v29  ;;  %5130 = vst [vmem:[#allocation80_spill] sm:$0xff] %v3844_v23  ;;  %v5146_v23 = vpack.c.bf16 %v3424_v26, %v3420_v46  ;;  %v3917_v46 = vmul.f32 %v3903_v39, %v3148_v54  ;;  %v3921_v26 = vmul.f32 %v3903_v39, %v3164_v12 }
 0x122   :  { %5131 = vst [vmem:[#allocation81_spill] sm:$0xff] %v3848_v40  ;;  %717 = vrot.lane.b32.xlu1 %v5134_v0, %s2788_s11  ;;  %v3869_v0 = vsel %vm729_vm7, %v3728_v51, %v3661_v35  ;;  %5147 = vst [vmem:[#allocation40_spill] sm:$0xff] %v3903_v39  ;;  %v3929_v35 = vmul.f32 %v3903_v39, %v3454_v28  ;;  %v5154_v40 = vld [vmem:[#allocation43_spill] sm:$0xff] }
 0x123   :  { %1316 = vrot.lane.b32.xlu0 %v5137_v5, %s2785_s24  ;;  %5138 = vst [vmem:[#allocation35_spill] sm:$0xff] %v3869_v0  ;;  %v3873_v5 = vsel %vm729_vm7, %v1616_v38, %v3730_v2  ;;  %v3877_v21 = vmul.f32 %v3869_v0, %v3150_v55  ;;  %v3881_v37 = vmul.f32 %v3869_v0, %v3166_v14  ;;  %v1807_v11 = vpop.permute.xlu0 %1806  ;;  %v5152_v38 = vld [vmem:[#allocation41_spill] sm:$0xff] }
 0x124   :  { %v3885_v20 = vmul.f32 %v3873_v5, %v3152_v56  ;;  %v3889_v16 = vmul.f32 %v3873_v5, %v3168_v19  ;;  %v5145_v2 = vpack.c.bf16 %v5143_v57, %v5144_v63  ;;  %v3913_v57 = vmul.f32 %v3728_v51, %v5111_v53  ;;  %5149 = vst [vmem:[#allocation83_spill] sm:$0xff] %v3929_v35 }
 0x125   :  { %5139 = vst [vmem:[#allocation34_spill] sm:$0xff] %v3877_v21  ;;  %5140 = vst [vmem:[#allocation37_spill] sm:$0xff] %v3881_v37  ;;  %v3937_v63 = vmul.f32 %v3869_v0, %v3515_v34  ;;  %v5153_v29 = vpack.c.bf16 %v3432_v17, %v5152_v38  ;;  %v3947_v21 = vpop.permute.xlu1 %516  ;;  %v3973_v38 = vmul.f32 %v3728_v51, %v3398_v3  ;;  %v5163_v17 = vld [vmem:[#allocation45_spill] sm:$0xff]  ;;  %v5166_v37 = vld [vmem:[#allocation47_spill] sm:$0xff] }
 0x126   :  { %5141 = vst [vmem:[#allocation36_spill] sm:$0xff] %v3885_v20  ;;  %5142 = vst [vmem:[#allocation82_spill] sm:$0xff] %v3889_v16  ;;  %1099 = vrot.lane.b32.xlu1 %v5145_v2, %s2786_s27  ;;  %v3925_v2 = vmul.f32 %v3903_v39, %v3172_v25  ;;  %v5155_v20 = vld [vmem:[#allocation42_spill] sm:$0xff] }
 0x127   :  { %520 = vrot.lane.b32.xlu0 %v5146_v23, %s2789_s13  ;;  %v3933_v23 = vmul.f32 %v3869_v0, %v3184_v27  ;;  %5151 = vst [vmem:[#allocation85_spill] sm:$0xff] %v3937_v63  ;;  %v5156_v16 = vpack.c.bf16 %v5154_v40, %v5155_v20  ;;  %5157 = vst [vmem:[#allocation41_spill] sm:$0xff] %v3947_v21  ;;  %v3961_v40 = vmul.f32 %v3873_v5, %v5086_v10  ;;  %v5164_v0 = vld [vmem:[#allocation44_spill] sm:$0xff] }
 0x128   :  { %5148 = vst [vmem:[#allocation39_spill] sm:$0xff] %v3925_v2  ;;  %v3965_v20 = vmul.f32 %v3873_v5, %v3577_v48  ;;  %5162 = vst [vmem:[#allocation88_spill] sm:$0xff] %v3973_v38  ;;  %v5165_v39 = vpack.c.bf16 %v5163_v17, %v5164_v0  ;;  %v5167_v21 = vpack.c.bf16 %v3475_v8, %v5166_v37 }
 0x129   :  { %5150 = vst [vmem:[#allocation84_spill] sm:$0xff] %v3933_v23  ;;  %5159 = vst [vmem:[#allocation42_spill] sm:$0xff] %v3961_v40  ;;  %v3987_v63 = vsel %vm536_vm8, %v3818_v52, %v1807_v11  ;;  %v3990_v2 = vsel %vm536_vm8, %v1807_v11, %v1809_v32  ;;  %v3998_v0 = vpop.permute.xlu1 %699 }
 0x12a   :  { %1103 = vrot.lane.b32.xlu1 %v5153_v29, %s2786_s27  ;;  %v3957_v29 = vpop.permute.xlu0 %1810  ;;  %5160 = vst [vmem:[#allocation86_spill] sm:$0xff] %v3965_v20  ;;  %5168 = vst [vmem:[#allocation45_spill] sm:$0xff] %v3998_v0  ;;  %v4002_v8 = vmul.f32 %v3990_v2, %v3148_v54  ;;  %v4010_v11 = vmul.f32 %v3987_v63, %v3150_v55  ;;  %v4018_v37 = vmul.f32 %v3987_v63, %v3184_v27  ;;  %v5202_v54 = vld [vmem:[#allocation62_spill] sm:$0xff] }
 0x12b   :  { %524 = vrot.lane.b32.xlu0 %v5156_v16, %s2789_s13  ;;  %5158 = vst [vmem:[#allocation43_spill] sm:$0xff] %v3957_v29  ;;  %v3969_v16 = vmul.f32 %v3728_v51, %v3170_v24  ;;  %v3994_v35 = vsel %vm536_vm8, %v1809_v32, %v3957_v29  ;;  %v4014_v32 = vmul.f32 %v3987_v63, %v3166_v14 }
 0x12c   :  { %5169 = vst [vmem:[#allocation44_spill] sm:$0xff] %v4010_v11  ;;  %5170 = vst [vmem:[#allocation47_spill] sm:$0xff] %v4018_v37  ;;  %v4022_v17 = vmul.f32 %v3987_v63, %v3515_v34  ;;  %v4030_v23 = vmul.f32 %v3994_v35, %v3168_v19  ;;  %v5174_v0 = vpack.c.bf16 %v3485_v41, %v3479_v61  ;;  %v5180_v37 = vld [vmem:[#allocation48_spill] sm:$0xff]  ;;  %v5238_v34 = vld [vmem:[#allocation71_spill] sm:$0xff] }
 0x12d   :  { %5161 = vst [vmem:[#allocation87_spill] sm:$0xff] %v3969_v16  ;;  %v5175_v29 = vpack.c.bf16 %v3493_v30, %v3489_v13  ;;  %v4050_v61 = vmul.f32 %v3994_v35, %v5086_v10  ;;  %v4054_v13 = vmul.f32 %v3994_v35, %v3577_v48  ;;  %v4060_v41 = vmul.f32 %v3818_v52, %v5109_v42  ;;  %v4092_v11 = vpop.permute.xlu1 %719 }
 0x12e   :  { %1314 = vrot.lane.b32.xlu1 %v5165_v39, %s2785_s24  ;;  %5171 = vst [vmem:[#allocation89_spill] sm:$0xff] %v4022_v17  ;;  %v4026_v39 = vmul.f32 %v3994_v35, %v3152_v56  ;;  %5173 = vst [vmem:[#allocation91_spill] sm:$0xff] %v4030_v23  ;;  %v4056_v30 = vpop.permute.xlu0 %506  ;;  %v4072_v20 = vmul.f32 %v3818_v52, %v3398_v3  ;;  %v4078_v38 = vmul.f32 %v3990_v2, %v3172_v25  ;;  %v5179_v23 = vld [vmem:[#allocation49_spill] sm:$0xff] }
 0x12f   :  { %906 = vrot.lane.b32.xlu0 %v5167_v21, %s2787_s30  ;;  %v4006_v21 = vmul.f32 %v3990_v2, %v3164_v12  ;;  %5176 = vst [vmem:[#allocation92_spill] sm:$0xff] %v4050_v61  ;;  %5177 = vst [vmem:[#allocation93_spill] sm:$0xff] %v4054_v13  ;;  %v4082_v16 = vmul.f32 %v3990_v2, %v3454_v28  ;;  %v5181_v17 = vpack.c.bf16 %v5179_v23, %v5180_v37  ;;  %v5182_v23 = vld [vmem:[#allocation51_spill] sm:$0xff]  ;;  %v5203_v12 = vld [vmem:[#allocation61_spill] sm:$0xff] }
 0x130   :  { %5172 = vst [vmem:[#allocation90_spill] sm:$0xff] %v4026_v39  ;;  %v5178_v39 = vpack.c.bf16 %v3503_v50, %v3497_v33  ;;  %v5183_v33 = vpack.c.bf16 %v3539_v62, %v5182_v23  ;;  %v5184_v37 = vpack.c.bf16 %v3547_v36, %v3543_v1  ;;  %v5185_v50 = vpack.c.bf16 %v3555_v47, %v3551_v58  ;;  %v5188_v1 = vld [vmem:[#allocation52_spill] sm:$0xff]  ;;  %v5198_v28 = vld [vmem:[#allocation59_spill] sm:$0xff] }
 0x131   :  { %v5186_v13 = vpack.c.bf16 %v3565_v44, %v3559_v49  ;;  %v5190_v23 = vld [vmem:[#allocation56_spill] sm:$0xff]  ;;  %v5194_v49 = vld [vmem:[#allocation58_spill] sm:$0xff]  ;;  %v5195_v44 = vld [vmem:[#allocation57_spill] sm:$0xff] }
 0x132   :  { %1318 = vrot.lane.b32.xlu1 %v5174_v0, %s2785_s24  ;;  %v4068_v0 = vmul.f32 %v3818_v52, %v3170_v24  ;;  %v4116_v61 = vpop.permute.xlu0 %526  ;;  %v5193_v58 = vld [vmem:[#allocation12_spill] sm:$0xff] }
 0x133   :  { %910 = vrot.lane.b32.xlu0 %v5175_v29, %s2787_s30  ;;  %v4064_v29 = vmul.f32 %v3818_v52, %v5111_v53  ;;  %v1442_v47 = vmul.f32 %v3692_v15, %v5193_v58 }
 0x136   :  { %721 = vrot.lane.b32.xlu1 %v5178_v39, %s2788_s11  ;;  %v4126_v39 = vpop.permute.xlu1 %902 }
 0x137   :  { %528 = vrot.lane.b32.xlu0 %v5181_v17, %s2789_s13  ;;  %v4128_v17 = vpop.permute.xlu0 %709 }
 0x13a   :  { %725 = vrot.lane.b32.xlu1 %v5183_v33, %s2788_s11  ;;  %v4138_v62 = vpop.permute.xlu1 %1085  ;;  %v5187_v33 = vld [vmem:[#allocation53_spill] sm:$0xff] }
 0x13b   :  { %532 = vrot.lane.b32.xlu0 %v5184_v37, %s2789_s13  ;;  %v5189_v36 = vpack.c.bf16 %v5187_v33, %v5188_v1  ;;  %v5191_v37 = vld [vmem:[#allocation55_spill] sm:$0xff]  ;;  %v4148_v25 = vpop.permute.xlu0 %892 }
 0x13c   :  { %v5192_v40 = vpack.c.bf16 %v5190_v23, %v5191_v37  ;;  %v5200_v1 = vld [vmem:[#allocation7_spill] sm:$0xff] }
 0x13e   :  { %1107 = vrot.lane.b32.xlu1 %v5185_v50, %s2786_s27  ;;  %v5197_v50 = vld [vmem:[#allocation60_spill] sm:$0xff]  ;;  %v4162_v23 = vpop.permute.xlu1 %1105 }
 0x13f   :  { %914 = vrot.lane.b32.xlu0 %v5186_v13, %s2787_s30  ;;  %v5196_v13 = vpack.c.bf16 %v5194_v49, %v5195_v44  ;;  %v5199_v33 = vpack.c.bf16 %v5197_v50, %v5198_v28  ;;  %v4165_v48 = vpop.permute.xlu0 %912  ;;  %v5204_v49 = vpack.c.bf16 %v5202_v54, %v5203_v12  ;;  %v5210_v54 = vld [vmem:[#allocation9_spill] sm:$0xff] }
 0x140   :  { %v1436_v12 = vmul.f32 %v3643_v43, %v5210_v54 }
 0x142   :  { %1111 = vrot.lane.b32.xlu1 %v5189_v36, %s2786_s27  ;;  %v1437_v36 = vmul.f32 %v3692_v15, %v5200_v1  ;;  %v4174_v28 = vpop.permute.xlu1 %1310 }
 0x143   :  { %918 = vrot.lane.b32.xlu0 %v5192_v40, %s2787_s30  ;;  %v5201_v40 = vld [vmem:[#allocation27_spill] sm:$0xff]  ;;  %5205 = vst [vmem:[#allocation49_spill] sm:$0xff] %v4174_v28  ;;  %v4178_v50 = vpop.permute.xlu0 %1095  ;;  %v5213_v28 = vld [vmem:[#allocation65_spill] sm:$0xff] }
 0x144   :  { %v1439_v37 = vmul.f32 0.0, %v5201_v40  ;;  %v1467_v10 = vpack.c.bf16 %v1442_v47, %v1437_v36  ;;  %v5207_v47 = vld [vmem:[#allocation64_spill] sm:$0xff]  ;;  %v5211_v40 = vld [vmem:[#allocation14_spill] sm:$0xff] }
 0x146   :  { %1326 = vrot.lane.b32.xlu1 %v5196_v13, %s2785_s24  ;;  %v4172_v44 = vpack.c.bf16 %v1439_v37, %v1439_v37  ;;  %v5206_v13 = vld [vmem:[#allocation13_spill] sm:$0xff]  ;;  %v1443_v37 = vmul.f32 %v3659_v4, %v5211_v40  ;;  %v4195_v3 = vpop.permute.xlu1 %1330 }
 0x147   :  { %1322 = vrot.lane.b32.xlu0 %v5199_v33, %s2785_s24  ;;  %v1441_v15 = vmul.f32 %v3643_v43, %v5206_v13  ;;  %v5208_v33 = vld [vmem:[#allocation63_spill] sm:$0xff]  ;;  %5215 = vst [vmem:[#allocation48_spill] sm:$0xff] %v4195_v3  ;;  %v5218_v43 = vld [vmem:[#allocation10_spill] sm:$0xff] }
 0x148   :  { %v5209_v36 = vpack.c.bf16 %v5207_v47, %v5208_v33  ;;  %v4197_v47 = vpop.permute.xlu0 %1320  ;;  %v5217_v33 = vld [vmem:[#allocation11_spill] sm:$0xff] }
 0x149   :  { %5216 = vst [vmem:[#allocation51_spill] sm:$0xff] %v4197_v47 }
 0x14a   :  { %530 = vrot.lane.b32.xlu1 %v5204_v49, %s2789_s13  ;;  %v5212_v49 = vld [vmem:[#allocation66_spill] sm:$0xff] }
 0x14b   :  { %1499 = vrot.lane.b32.xlu0 %v1467_v10, %s2784_s21  ;;  %v1466_v10 = vpack.c.bf16 %v1441_v15, %v1436_v12  ;;  %v5214_v24 = vpack.c.bf16 %v5212_v49, %v5213_v28  ;;  %v1440_v15 = vmul.f32 %v3481_v7, %v5218_v43  ;;  %v5219_v12 = vld [vmem:[#allocation68_spill] sm:$0xff]  ;;  %v5222_v28 = vld [vmem:[#allocation6_spill] sm:$0xff] }
 0x14e   :  { %534 = vrot.lane.b32.xlu1 %v5209_v36, %s2789_s13  ;;  %v1438_v36 = vmul.f32 %v3659_v4, %v5217_v33  ;;  %v5223_v4 = vpack.c.bf16 %v3702_v22, %v3698_v45  ;;  %v5228_v45 = vld [vmem:[#allocation69_spill] sm:$0xff]  ;;  %v5229_v22 = vld [vmem:[#allocation4_spill] sm:$0xff] }
 0x14f   :  { %1503 = vrot.lane.b32.xlu0 %v4172_v44, %s2784_s21 }
 0x150   :  { %v1468_v56 = vpack.c.bf16 %v1443_v37, %v1438_v36  ;;  %v5226_v36 = vld [vmem:[#allocation28_spill] sm:$0xff] }
 0x152   :  { %1497 = vrot.lane.b32.xlu1 %v1466_v10, %s2784_s21  ;;  %v5220_v10 = vld [vmem:[#allocation67_spill] sm:$0xff] }
 0x153   :  { %1507 = vrot.lane.b32.xlu0 %v5214_v24, %s2784_s21  ;;  %v5221_v19 = vpack.c.bf16 %v5219_v12, %v5220_v10  ;;  %v1435_v24 = vmul.f32 %v3481_v7, %v5222_v28  ;;  %v5225_v7 = vld [vmem:[#allocation5_spill] sm:$0xff]  ;;  %v5230_v10 = vpack.c.bf16 %v5228_v45, %v5229_v22 }
 0x154   :  { %v5227_v12 = vpack.c.bf16 %v5225_v7, %v5226_v36  ;;  %v5235_v7 = vld [vmem:[#allocation32_spill] sm:$0xff] }
 0x155   :  { %v1465_v47 = vpack.c.bf16 %v1440_v15, %v1435_v24  ;;  %v5231_v24 = vld [vmem:[#allocation29_spill] sm:$0xff] }
 0x156   :  { %1501 = vrot.lane.b32.xlu1 %v1468_v56, %s2784_s21 }
 0x157   :  { %1511 = vrot.lane.b32.xlu0 %v5221_v19, %s2784_s21  ;;  %v5224_v19 = vpack.c.bf16 %v3710_v59, %v3706_v60 }
 0x158   :  { %v4210_v49 = vpop.permute.xlu1 %701  ;;  %v509_v3 = vpop.permute.xlu0 %508 }
 0x15a   :  { %1495 = vrot.lane.b32.xlu1 %v1465_v47, %s2784_s21 }
 0x15b   :  { %723 = vrot.lane.b32.xlu0 %v5223_v4, %s2788_s11  ;;  %v5232_v4 = vld [vmem:[#allocation30_spill] sm:$0xff] }
 0x15c   :  { %v4217_v56 = vpop.permute.xlu1 %705  ;;  %v513_v37 = vpop.permute.xlu0 %512  ;;  %v5233_v27 = vpack.c.bf16 %v5231_v24, %v5232_v4 }
 0x15e   :  { %1509 = vrot.lane.b32.xlu1 %v5224_v19, %s2784_s21  ;;  %v5234_v19 = vld [vmem:[#allocation31_spill] sm:$0xff] }
 0x15f   :  { %727 = vrot.lane.b32.xlu0 %v5227_v12, %s2788_s11  ;;  %v5236_v36 = vpack.c.bf16 %v5234_v19, %v5235_v7  ;;  %v5237_v12 = vld [vmem:[#allocation72_spill] sm:$0xff] }
 0x160   :  { %v4227_v15 = vpop.permute.xlu1 %1087  ;;  %v5239_v42 = vpack.c.bf16 %v5237_v12, %v5238_v34  ;;  %v5245_v34 = vld [vmem:[#allocation76_spill] sm:$0xff] }
 0x161   :  { %v4229_v47 = vpop.permute.xlu0 %894  ;;  %v5248_v12 = vld [vmem:[#allocation8_spill] sm:$0xff] }
 0x162   :  { %916 = vrot.lane.b32.xlu1 %v5230_v10, %s2787_s30  ;;  %v5243_v10 = vld [vmem:[#allocation73_spill] sm:$0xff] }
 0x163   :  { %1505 = vrot.lane.b32.xlu0 %v5233_v27, %s2784_s21  ;;  %v5242_v27 = vld [vmem:[#allocation74_spill] sm:$0xff] }
 0x164   :  { %v4239_v60 = vpop.permute.xlu1 %1091  ;;  %v5244_v24 = vpack.c.bf16 %v5242_v27, %v5243_v10  ;;  %v537_v27 = vsel %vm536_vm8, %v4056_v30, %v509_v3 }
 0x165   :  { %v4241_v59 = vpop.permute.xlu0 %898 }
 0x166   :  { %920 = vrot.lane.b32.xlu1 %v5236_v36, %s2787_s30 }
 0x167   :  { %1109 = vrot.lane.b32.xlu0 %v5239_v42, %s2786_s27  ;;  %v5246_v42 = vld [vmem:[#allocation75_spill] sm:$0xff] }
 0x168   :  { %v4251_v45 = vpop.permute.xlu1 %1306  ;;  %v5247_v36 = vpack.c.bf16 %v5245_v34, %v5246_v42  ;;  %v5251_v34 = vpack.c.bf16 %v3822_v9, %v3816_v6  ;;  %v5252_v42 = vld [vmem:[#allocation77_spill] sm:$0xff]  ;;  %v5256_v6 = vld [vmem:[#allocation78_spill] sm:$0xff] }
 0x169   :  { %5240 = vst [vmem:[#allocation53_spill] sm:$0xff] %v4251_v45  ;;  %v4253_v22 = vpop.permute.xlu0 %1302 }
 0x16a   :  { %5241 = vst [vmem:[#allocation52_spill] sm:$0xff] %v4253_v22  ;;  %1513 = vrot.lane.b32.xlu1 %v4172_v44, %s2784_s21  ;;  %v5249_v22 = vld [vmem:[#allocation33_spill] sm:$0xff] }
 0x16b   :  { %1113 = vrot.lane.b32.xlu0 %v5244_v24, %s2786_s27  ;;  %v5250_v45 = vpack.c.bf16 %v5248_v12, %v5249_v22  ;;  %v5253_v22 = vpack.c.bf16 %v3830_v31, %v5252_v42  ;;  %v5255_v12 = vld [vmem:[#allocation79_spill] sm:$0xff]  ;;  %v5259_v31 = vld [vmem:[#allocation80_spill] sm:$0xff] }
 0x16c   :  { %v511_v4 = vpop.permute.xlu1 %510  ;;  %v5257_v9 = vpack.c.bf16 %v5255_v12, %v5256_v6 }
 0x16d   :  { %v4261_v19 = vpop.permute.xlu0 %703  ;;  %v538_v7 = vsel %vm536_vm8, %v509_v3, %v511_v4 }
 0x16e   :  { %1517 = vrot.lane.b32.xlu1 %v5247_v36, %s2784_s21  ;;  %2171 = vmatprep.subr.bf16.mxu0 %v538_v7  ;;  %v5254_v7 = vld [vmem:[#allocation40_spill] sm:$0xff] }
 0x16f   :  { %1324 = vrot.lane.b32.xlu0 %v5250_v45, %s2785_s24  ;;  %2172 = vmatpush1.bf16.msra.mxu0 %v537_v27  ;;  %v539_v45 = vsel %vm536_vm8, %v511_v4, %v513_v37  ;;  %v1635_v36 = vmul.f32 %v5254_v7, %v5193_v58  ;;  %v5258_v27 = vld [vmem:[#allocation81_spill] sm:$0xff] }
 0x170   :  { %v515_v10 = vpop.permute.xlu1 %514 }
 0x171   :  { %v4274_v24 = vpop.permute.xlu0 %707  ;;  %v540_v53 = vsel %vm536_vm8, %v513_v37, %v515_v10  ;;  %v5260_v10 = vpack.c.bf16 %v5258_v27, %v5259_v31  ;;  %v5261_v37 = vld [vmem:[#allocation70_spill] sm:$0xff]  ;;  %v1636_v31 = vmul.f32 %v3873_v5, %v5211_v40 }
 0x172   :  { %1521 = vrot.lane.b32.xlu1 %v5251_v34, %s2784_s21  ;;  %2297 = vmatprep.subr.bf16.mxu1 %v540_v53  ;;  %v1630_v53 = vmul.f32 %v5254_v7, %v5200_v1  ;;  %v1632_v4 = vmul.f32 0.0, %v5261_v37  ;;  %v2760_v7 = vld [vmem:[%s4870_s3 + $0x4] ss:$16 sps:$4 sm:$0xff]  }
 0x173   :  { %1328 = vrot.lane.b32.xlu0 %v5253_v22, %s2785_s24  ;;  %2298 = vmatpush1.bf16.msra.mxu1 %v539_v45  ;;  %v5262_v45 = vld [vmem:[#allocation35_spill] sm:$0xff] }
 0x174   :  { %v4286_v3 = vpop.permute.xlu1 %896  ;;  %v1660_v22 = vpack.c.bf16 %v1635_v36, %v1630_v53  ;;  %v1634_v55 = vmul.f32 %v5262_v45, %v5206_v13  ;;  %v1629_v12 = vmul.f32 %v5262_v45, %v5210_v54  ;;  %v1662_v6 = vpack.c.bf16 %v1632_v4, %v1632_v4  ;;  %2203 = vmatprep.mubr.bf16.mxu0 %v2760_v7 }
 0x175   :  { %v4288_v30 = vpop.permute.xlu0 %1089  ;;  %2329 = vmatprep.mubr.bf16.mxu1 %v2760_v7  ;;  %v1633_v4 = vmul.f32 %v3728_v51, %v5218_v43 }
 0x176   :  { %1515 = vrot.lane.b32.xlu1 %v5257_v9, %s2784_s21  ;;  %v1659_v36 = vpack.c.bf16 %v1634_v55, %v1629_v12  ;;  %v5265_v55 = vld [vmem:[#allocation37_spill] sm:$0xff]  ;;  %v1628_v12 = vmul.f32 %v3728_v51, %v5222_v28  ;;  %v5271_v51 = vpack.c.bf16 %v3913_v57, %v3909_v18  ;;  %v1827_v18 = vmul.f32 %v3987_v63, %v5206_v13 }
 0x177   :  { %1519 = vrot.lane.b32.xlu0 %v5260_v10, %s2784_s21  ;;  %v5276_v57 = vld [vmem:[#allocation85_spill] sm:$0xff]  ;;  %v1826_v13 = vmul.f32 %v3818_v52, %v5218_v43 }
 0x178   :  { %v4303_v34 = vpop.permute.xlu1 %900 }
 0x179   :  { %v4305_v42 = vpop.permute.xlu0 %1093 }
 0x17a   :  { %1692 = vrot.lane.b32.xlu1 %v1660_v22, %s2783_s19  ;;  %v5266_v22 = vld [vmem:[#allocation34_spill] sm:$0xff] }
 0x17b   :  { %1523 = vrot.lane.b32.xlu0 %v4172_v44, %s2784_s21  ;;  %v1631_v44 = vmul.f32 %v3873_v5, %v5217_v33  ;;  %v5267_v45 = vpack.c.bf16 %v5265_v55, %v5266_v22 }
 0x17c   :  { %v519_v9 = vpop.permute.xlu1 %518 }
 0x17d   :  { %v4317_v27 = vpop.permute.xlu0 %1304  ;;  %v1661_v37 = vpack.c.bf16 %v1636_v31, %v1631_v44  ;;  %v5268_v31 = vld [vmem:[#allocation82_spill] sm:$0xff]  ;;  %v5269_v44 = vld [vmem:[#allocation36_spill] sm:$0xff] }
 0x17e   :  { %5263 = vst [vmem:[#allocation56_spill] sm:$0xff] %v4317_v27  ;;  %1696 = vrot.lane.b32.xlu1 %v1662_v6, %s2783_s19 }
 0x17f   :  { %1690 = vrot.lane.b32.xlu0 %v1659_v36, %s2783_s19  ;;  %v1658_v36 = vpack.c.bf16 %v1633_v4, %v1628_v12 }
 0x180   :  { %v523_v10 = vpop.permute.xlu1 %522 }
 0x181   :  { %v4325_v53 = vpop.permute.xlu0 %1308 }
 0x182   :  { %5264 = vst [vmem:[#allocation55_spill] sm:$0xff] %v4325_v53  ;;  %1700 = vrot.lane.b32.xlu1 %v5267_v45, %s2783_s19  ;;  %v5270_v53 = vpack.c.bf16 %v5268_v31, %v5269_v44  ;;  %v5274_v45 = vld [vmem:[#allocation39_spill] sm:$0xff]  ;;  %v1822_v44 = vmul.f32 %v3987_v63, %v5210_v54 }
 0x183   :  { %1694 = vrot.lane.b32.xlu0 %v1661_v37, %s2783_s19  ;;  %v5272_v37 = vpack.c.bf16 %v3921_v26, %v3917_v46  ;;  %v5277_v46 = vld [vmem:[#allocation84_spill] sm:$0xff] }
 0x184   :  { %v4336_v7 = vpop.permute.xlu1 %904  ;;  %v5278_v26 = vpack.c.bf16 %v5276_v57, %v5277_v46  ;;  %v1824_v57 = vmul.f32 %v3994_v35, %v5217_v33  ;;  %v5287_v33 = vld [vmem:[#allocation43_spill] sm:$0xff] }
 0x185   :  { %v4338_v5 = vpop.permute.xlu0 %711 }
 0x186   :  { %1704 = vrot.lane.b32.xlu1 %v5270_v53, %s2783_s19  ;;  %v5273_v53 = vld [vmem:[#allocation83_spill] sm:$0xff] }
 0x187   :  { %1688 = vrot.lane.b32.xlu0 %v1658_v36, %s2783_s19  ;;  %v5275_v12 = vpack.c.bf16 %v5273_v53, %v5274_v45  ;;  %v1852_v53 = vpack.c.bf16 %v1827_v18, %v1822_v44  ;;  %v1829_v45 = vmul.f32 %v3994_v35, %v5211_v40  ;;  %v1828_v18 = vmul.f32 %v3990_v2, %v5193_v58  ;;  %v5283_v35 = vld [vmem:[#allocation88_spill] sm:$0xff]  ;;  %v5286_v58 = vld [vmem:[#allocation41_spill] sm:$0xff] }
 0x188   :  { %v4345_v27 = vpop.permute.xlu1 %908  ;;  %v541_v40 = vsel %vm536_vm8, %v5286_v58, %v519_v9 }
 0x189   :  { %v4347_v55 = vpop.permute.xlu0 %715  ;;  %v1854_v63 = vpack.c.bf16 %v1829_v45, %v1824_v57  ;;  %v5284_v45 = vld [vmem:[#allocation87_spill] sm:$0xff]  ;;  %v1823_v57 = vmul.f32 %v3990_v2, %v5200_v1 }
 0x18a   :  { %1698 = vrot.lane.b32.xlu1 %v5271_v51, %s2783_s19 }
 0x18b   :  { %1702 = vrot.lane.b32.xlu0 %v5272_v37, %s2783_s19  ;;  %v1853_v54 = vpack.c.bf16 %v1828_v18, %v1823_v57  ;;  %v5292_v18 = vld [vmem:[#allocation47_spill] sm:$0xff] }
 0x18c   :  { %v1313_v4 = vpop.permute.xlu1 %1312 }
 0x18d   :  { %v4357_v22 = vpop.permute.xlu0 %1097 }
 0x18e   :  { %1712 = vrot.lane.b32.xlu1 %v5275_v12, %s2783_s19  ;;  %v5279_v12 = vld [vmem:[#allocation86_spill] sm:$0xff] }
 0x18f   :  { %1706 = vrot.lane.b32.xlu0 %v1662_v6, %s2783_s19 }
 0x190   :  { %v4364_v36 = vpop.permute.xlu1 %713 }
 0x191   :  { %v1102_v31 = vpop.permute.xlu0 %1101 }
 0x192   :  { %1716 = vrot.lane.b32.xlu1 %v1662_v6, %s2783_s19  ;;  %v5280_v6 = vld [vmem:[#allocation42_spill] sm:$0xff] }
 0x193   :  { %1710 = vrot.lane.b32.xlu0 %v5278_v26, %s2783_s19  ;;  %v5281_v14 = vpack.c.bf16 %v5279_v12, %v5280_v6  ;;  %v5285_v12 = vpack.c.bf16 %v5283_v35, %v5284_v45  ;;  %v1821_v6 = vmul.f32 %v3818_v52, %v5222_v28 }
 0x194   :  { %v4375_v51 = vpop.permute.xlu1 %717 }
 0x195   :  { %v1317_v37 = vpop.permute.xlu0 %1316 }
 0x196   :  { %1883 = vrot.lane.b32.xlu1 %v1852_v53, %s2782_s14 }
 0x197   :  { %1714 = vrot.lane.b32.xlu0 %v5281_v14, %s2783_s19 }
 0x198   :  { %v1100_v46 = vpop.permute.xlu1 %1099 }
 0x199   :  { %v521_v26 = vpop.permute.xlu0 %520  ;;  %v4391_v44 = vsel %vm1115_vm5, %v1100_v46, %v1102_v31  ;;  %v4396_v14 = vsel %vm1115_vm5, %v4357_v22, %v1100_v46  ;;  %v1825_v46 = vmul.f32 0.0, %v5287_v33 }
 0x19a   :  { %5282 = vst [vmem:[#allocation58_spill] sm:$0xff] %v4391_v44  ;;  %v542_v53 = vsel %vm536_vm8, %v519_v9, %v521_v26  ;;  %1887 = vrot.lane.b32.xlu1 %v1854_v63, %s2782_s14  ;;  %v1851_v44 = vpack.c.bf16 %v1826_v13, %v1821_v6  ;;  %v543_v52 = vsel %vm536_vm8, %v521_v26, %v523_v10 }
 0x19b   :  { %1708 = vrot.lane.b32.xlu0 %v5285_v12, %s2783_s19  ;;  %2173 = vmatprep.subr.bf16.mxu0 %v542_v53  ;;  %v1855_v2 = vpack.c.bf16 %v1825_v46, %v1825_v46  ;;  %v5294_v53 = vld [vmem:[#allocation91_spill] sm:$0xff]  ;;  %v5295_v12 = vld [vmem:[#allocation90_spill] sm:$0xff]  ;;  %v5297_v46 = vld [vmem:[#allocation93_spill] sm:$0xff] }
 0x19c   :  { %2174 = vmatpush1.bf16.msra.mxu0 %v541_v40  ;;  %v1104_v43 = vpop.permute.xlu1 %1103 }
 0x19d   :  { %v525_v63 = vpop.permute.xlu0 %524  ;;  %v4412_v45 = vsel %vm1115_vm5, %v1102_v31, %v1104_v43  ;;  %v5288_v43 = vpack.c.bf16 %v4006_v21, %v4002_v8  ;;  %v5291_v21 = vld [vmem:[#allocation89_spill] sm:$0xff] }
 0x19e   :  { %v544_v35 = vsel %vm536_vm8, %v523_v10, %v525_v63  ;;  %1881 = vrot.lane.b32.xlu1 %v1851_v44, %s2782_s14  ;;  %v5293_v44 = vpack.c.bf16 %v5291_v21, %v5292_v18  ;;  %v2073_v21 = vld [vmem:[%s4871_s4 + $0x28] sm:$0xff] }
 0x19f   :  { %1885 = vrot.lane.b32.xlu0 %v1853_v54, %s2782_s14  ;;  %2299 = vmatprep.subr.bf16.mxu1 %v544_v35  ;;  %v5300_v35 = vpack.c.bf16 %v4064_v29, %v4060_v41 }
 0x1a0   :  { %2300 = vmatpush1.bf16.msra.mxu1 %v543_v52  ;;  %v1315_v58 = vpop.permute.xlu1 %1314 }
 0x1a1   :  { %v4417_v40 = vpop.permute.xlu0 %906  ;;  %v4420_v13 = vsel %vm1016_vm4, %v1313_v4, %v1315_v58  ;;  %v4423_v33 = vsel %vm1016_vm4, %v1315_v58, %v1317_v37  ;;  %v5289_v4 = vld [vmem:[#allocation44_spill] sm:$0xff] }
 0x1a2   :  { %1895 = vrot.lane.b32.xlu1 %v5288_v43, %s2782_s14  ;;  %v5290_v31 = vpack.c.bf16 %v4014_v32, %v5289_v4  ;;  %v5298_v32 = vld [vmem:[#allocation92_spill] sm:$0xff]  ;;  %v5301_v43 = vpack.c.bf16 %v4072_v20, %v4068_v0  ;;  %v5302_v4 = vpack.c.bf16 %v4082_v16, %v4078_v38  ;;  %v2071_v20 = vld [vmem:[%s4871_s4 + $0x18] sm:$0xff] }
 0x1a3   :  { %1889 = vrot.lane.b32.xlu0 %v1855_v2, %s2782_s14  ;;  %v5299_v63 = vpack.c.bf16 %v5297_v46, %v5298_v32  ;;  %v2068_v16 = vld [vmem:[%s4871_s4] sm:$0xff]  ;;  %v731_v32 = vsel %vm729_vm7, %v4210_v49, %v4261_v19 }
 0x1a4   :  { %v4430_v54 = vpop.permute.xlu1 %1318 }
 0x1a5   :  { %v4432_v9 = vpop.permute.xlu0 %910  ;;  %v4436_v10 = vsel %vm1016_vm4, %v1317_v37, %v4430_v54  ;;  %v5296_v37 = vpack.c.bf16 %v5294_v53, %v5295_v12 }
 0x1a6   :  { %1899 = vrot.lane.b32.xlu1 %v1855_v2, %s2782_s14 }
 0x1a7   :  { %1893 = vrot.lane.b32.xlu0 %v5290_v31, %s2782_s14  ;;  %v2069_v31 = vld [vmem:[%s4871_s4 + $0x8] sm:$0xff] }
 0x1a8   :  { %v4443_v26 = vpop.permute.xlu1 %721 }
 0x1a9   :  { %v529_v8 = vpop.permute.xlu0 %528 }
 0x1aa   :  { %1903 = vrot.lane.b32.xlu1 %v5293_v44, %s2782_s14  ;;  %v545_v12 = vsel %vm536_vm8, %v4116_v61, %v529_v8  ;;  %v5303_v61 = vld [vmem:[#allocation45_spill] sm:$0xff] }
 0x1ab   :  { %1897 = vrot.lane.b32.xlu0 %v5296_v37, %s2782_s14  ;;  %v2072_v37 = vld [vmem:[%s4871_s4 + $0x20] sm:$0xff] }
 0x1ac   :  { %v4453_v6 = vpop.permute.xlu1 %725 }
 0x1ad   :  { %v533_v57 = vpop.permute.xlu0 %532 }
 0x1ae   :  { %1907 = vrot.lane.b32.xlu1 %v5299_v63, %s2782_s14 }
 0x1af   :  { %1891 = vrot.lane.b32.xlu0 %v5300_v35, %s2782_s14 }
 0x1b0   :  { %v4463_v52 = vpop.permute.xlu1 %1107 }
 0x1b1   :  { %v4465_v58 = vpop.permute.xlu0 %914 }
 0x1b2   :  { %1901 = vrot.lane.b32.xlu1 %v5301_v43, %s2782_s14 }
 0x1b3   :  { %1905 = vrot.lane.b32.xlu0 %v5302_v4, %s2782_s14  ;;  %v733_v4 = vsel %vm729_vm7, %v4217_v56, %v4274_v24  ;;  %v734_v24 = vsel %vm729_vm7, %v4128_v17, %v4338_v5 }
 0x1b4   :  { %v4478_v41 = vpop.permute.xlu1 %1111 }
 0x1b5   :  { %v4480_v29 = vpop.permute.xlu0 %918 }
 0x1b6   :  { %2081 = vperm.xlu1 %2757, %v2069_v31   ;;  %v2472_v31 = vld [vmem:[%s4872_s6] sm:$0xff] }
 0x1b7   :  { %1909 = vrot.lane.b32.xlu0 %v1855_v2, %s2782_s14  ;;  %v2070_v2 = vld [vmem:[%s4871_s4 + $0x10] sm:$0xff] }
 0x1b8   :  { %v4489_v38 = vpop.permute.xlu1 %1326 }
 0x1b9   :  { %v4491_v0 = vpop.permute.xlu0 %1322 }
 0x1ba   :  { %2091 = vperm.xlu1 %2757, %v2071_v20  }
 0x1bb   :  { %2076 = vperm.xlu0 %2756, %v2068_v16  }
 0x1bc   :  { %v531_v18 = vpop.permute.xlu1 %530 }
 0x1bd   :  { %v4499_v44 = vpop.permute.xlu0 %1499  ;;  %v546_v53 = vsel %vm536_vm8, %v529_v8, %v531_v18  ;;  %v547_v43 = vsel %vm536_vm8, %v531_v18, %v533_v57  ;;  %v730_v8 = vsel %vm729_vm7, %v5303_v61, %v4210_v49  ;;  %v732_v49 = vsel %vm729_vm7, %v4261_v19, %v4217_v56 }
 0x1be   :  { %2101 = vperm.xlu1 %2757, %v2073_v21   ;;  %2175 = vmatprep.subr.bf16.mxu0 %v546_v53  ;;  %v737_v21 = vsel %vm729_vm7, %v4347_v55, %v4375_v51  ;;  %v736_v53 = vsel %vm729_vm7, %v4364_v36, %v4347_v55  ;;  %v924_v51 = vsel %vm922_vm6, %v4229_v47, %v4286_v3 }
 0x1bf   :  { %2086 = vperm.xlu0 %2756, %v2070_v2   ;;  %2176 = vmatpush1.bf16.msra.mxu0 %v545_v12 }
 0x1c0   :  { %v535_v46 = vpop.permute.xlu1 %534  ;;  %2177 = vmatprep.subr.bf16.mxu0 %v731_v32 }
 0x1c1   :  { %v4510_v63 = vpop.permute.xlu0 %1503  ;;  %v548_v35 = vsel %vm536_vm8, %v533_v57, %v535_v46  ;;  %v735_v57 = vsel %vm729_vm7, %v4338_v5, %v4364_v36  ;;  %v738_v5 = vsel %vm729_vm7, %v4092_v11, %v4443_v26  ;;  %v923_v11 = vsel %vm922_vm6, %v4148_v25, %v4229_v47 }
 0x1c2   :  { %2301 = vmatprep.subr.bf16.mxu1 %v548_v35  ;;  %v926_v46 = vsel %vm922_vm6, %v4241_v59, %v4303_v34  ;;  %v927_v25 = vsel %vm922_vm6, %v4126_v39, %v4336_v7  ;;  %v930_v34 = vsel %vm922_vm6, %v4345_v27, %v4432_v9  ;;  %v931_v39 = vsel %vm922_vm6, %v4165_v48, %v4465_v58 }
 0x1c3   :  { %2096 = vperm.xlu0 %2756, %v2072_v37   ;;  %2302 = vmatpush1.bf16.msra.mxu1 %v547_v43  ;;  %v1116_v48 = vsel %vm1115_vm5, %v4138_v62, %v4227_v15  ;;  %v1118_v62 = vsel %vm1115_vm5, %v4288_v30, %v4239_v60 }
 0x1c4   :  { %2178 = vmatpush1.bf16.msra.mxu0 %v730_v8  ;;  %v4523_v20 = vpop.permute.xlu1 %1497  ;;  %2303 = vmatprep.subr.bf16.mxu1 %v733_v4 }
 0x1c5   :  { %v4528_v16 = vpop.permute.xlu0 %1507  ;;  %2179 = vmatprep.subr.bf16.mxu0 %v735_v57 }
 0x1c7   :  { %2475 = vperm.xlu0 %2756, %v2472_v31   ;;  %2304 = vmatpush1.bf16.msra.mxu1 %v732_v49  ;;  %v5305_v31 = vld [vmem:[#allocation13_spill] sm:$0xff] }
 0x1c8   :  { %2180 = vmatpush1.bf16.msra.mxu0 %v734_v24  ;;  %v4539_v2 = vpop.permute.xlu1 %1501  ;;  %2305 = vmatprep.subr.bf16.mxu1 %v737_v21  ;;  %v5307_v24 = vld [vmem:[#allocation10_spill] sm:$0xff] }
 0x1c9   :  { %v4541_v18 = vpop.permute.xlu0 %1511  ;;  %v1152_v21 = vpack.c.bf16 %v5307_v24, %v5222_v28  ;;  %v5336_v24 = vld [vmem:[#allocation24_spill] sm:$0xff] }
 0x1cb   :  { %2306 = vmatpush1.bf16.msra.mxu1 %v736_v53  ;;  %v5309_v53 = vld [vmem:[#allocation14_spill] sm:$0xff] }
 0x1cc   :  { %v4546_v56 = vpop.permute.xlu1 %1495 }
 0x1cd   :  { %v724_v19 = vpop.permute.xlu0 %723 }
 0x1ce   :  { %v739_v17 = vsel %vm729_vm7, %v4443_v26, %v724_v19  ;;  %v740_v37 = vsel %vm729_vm7, %v724_v19, %v4453_v6  ;;  %v928_v26 = vsel %vm922_vm6, %v4336_v7, %v4417_v40 }
 0x1cf   :  { %2181 = vmatprep.subr.bf16.mxu0 %v739_v17 }
 0x1d0   :  { %2182 = vmatpush1.bf16.msra.mxu0 %v738_v5  ;;  %v4556_v12 = vpop.permute.xlu1 %1509  ;;  %v5310_v5 = vld [vmem:[#allocation21_spill] sm:$0xff] }
 0x1d1   :  { %2183 = vmatprep.subr.bf16.mxu0 %v924_v51  ;;  %v728_v55 = vpop.permute.xlu0 %727  ;;  %v5311_v51 = vld [vmem:[#allocation17_spill] sm:$0xff] }
 0x1d2   :  { %v741_v36 = vsel %vm729_vm7, %v4453_v6, %v728_v55  ;;  %v925_v6 = vsel %vm922_vm6, %v4286_v3, %v4241_v59  ;;  %v929_v59 = vsel %vm922_vm6, %v4417_v40, %v4345_v27  ;;  %v1117_v3 = vsel %vm1115_vm5, %v4227_v15, %v4288_v30 }
 0x1d3   :  { %2307 = vmatprep.subr.bf16.mxu1 %v741_v36  ;;  %v1119_v40 = vsel %vm1115_vm5, %v4239_v60, %v4305_v42  ;;  %v5306_v60 = vld [vmem:[#allocation58_spill] sm:$0xff]  ;;  %v5312_v55 = vpack.c.bf16 %v5310_v5, %v5311_v51 }
 0x1d4   :  { %2184 = vmatpush1.bf16.msra.mxu0 %v923_v11  ;;  %2308 = vmatpush1.bf16.msra.mxu1 %v740_v37  ;;  %v917_v32 = vpop.permute.xlu1 %916  ;;  %v5313_v37 = vld [vmem:[#allocation12_spill] sm:$0xff]  ;;  %v5314_v11 = vld [vmem:[#allocation19_spill] sm:$0xff] }
 0x1d5   :  { %2185 = vmatprep.subr.bf16.mxu0 %v928_v26  ;;  %2309 = vmatprep.subr.bf16.mxu1 %v926_v46  ;;  %v4571_v35 = vpop.permute.xlu0 %1505  ;;  %v932_v47 = vsel %vm922_vm6, %v4465_v58, %v917_v32  ;;  %v933_v27 = vsel %vm922_vm6, %v917_v32, %v4480_v29  ;;  %v1154_v28 = vpack.c.bf16 %v5313_v37, %v5200_v1  ;;  %v5315_v26 = vld [vmem:[#allocation15_spill] sm:$0xff]  ;;  %v5317_v32 = vld [vmem:[#allocation50_spill] sm:$0xff] }
 0x1d6   :  { %v2761_v51 = vld [vmem:[%s4870_s3 + $0x24] ss:$16 sps:$4 sm:$0xff]  }
 0x1d8   :  { %2186 = vmatpush1.bf16.msra.mxu0 %v927_v25  ;;  %2310 = vmatpush1.bf16.msra.mxu1 %v925_v6  ;;  %v921_v43 = vpop.permute.xlu1 %920  ;;  %v5318_v6 = vld [vmem:[#allocation25_spill] sm:$0xff] }
 0x1d9   :  { %2187 = vmatprep.subr.bf16.mxu0 %v932_v47  ;;  %2311 = vmatprep.subr.bf16.mxu1 %v930_v34  ;;  %v1110_v61 = vpop.permute.xlu0 %1109  ;;  %v934_v7 = vsel %vm922_vm6, %v4480_v29, %v921_v43  ;;  %v1120_v29 = vsel %vm1115_vm5, %v4178_v50, %v4357_v22  ;;  %v1124_v50 = vsel %vm1115_vm5, %v4162_v23, %v4463_v52  ;;  %v5304_v22 = vld [vmem:[#allocation9_spill] sm:$0xff]  ;;  %v5320_v47 = vld [vmem:[#allocation22_spill] sm:$0xff] }
 0x1da   :  { %v1125_v15 = vsel %vm1115_vm5, %v4463_v52, %v1110_v61  ;;  %v1153_v57 = vpack.c.bf16 %v5305_v31, %v5304_v22  ;;  %v1126_v23 = vsel %vm1115_vm5, %v1110_v61, %v4478_v41  ;;  %v5308_v52 = vld [vmem:[#allocation11_spill] sm:$0xff]  ;;  %v5319_v25 = vpack.c.bf16 %v5317_v32, %v5318_v6  ;;  %v5321_v34 = vld [vmem:[#allocation18_spill] sm:$0xff]  ;;  %v5334_v31 = vld [vmem:[#allocation52_spill] sm:$0xff] }
 0x1db   :  { %v1155_v19 = vpack.c.bf16 %v5309_v53, %v5308_v52  ;;  %v5322_v43 = vpack.c.bf16 %v5320_v47, %v5321_v34  ;;  %v5339_v52 = vld [vmem:[#allocation55_spill] sm:$0xff]  ;;  %v5341_v32 = vld [vmem:[#allocation48_spill] sm:$0xff]  ;;  %v1531_v34 = vsel %vm823_vm3, %v4528_v16, %v4556_v12 }
 0x1dc   :  { %2188 = vmatpush1.bf16.msra.mxu0 %v931_v39  ;;  %2312 = vmatpush1.bf16.msra.mxu1 %v929_v59  ;;  %v4595_v9 = vpop.permute.xlu1 %1513  ;;  %v5323_v59 = vld [vmem:[#allocation38_spill] sm:$0xff]  ;;  %v5324_v39 = vld [vmem:[#allocation23_spill] sm:$0xff] }
 0x1dd   :  { %2189 = vmatprep.subr.bf16.mxu0 %v1117_v3  ;;  %2313 = vmatprep.subr.bf16.mxu1 %v934_v7  ;;  %v1114_v8 = vpop.permute.xlu0 %1113  ;;  %v5325_v1 = vpack.c.bf16 %v5323_v59, %v5324_v39  ;;  %v5326_v3 = vld [vmem:[#allocation20_spill] sm:$0xff] }
 0x1de   :  { %v1127_v30 = vsel %vm1115_vm5, %v4478_v41, %v1114_v8  ;;  %v5316_v41 = vpack.c.bf16 %v5314_v11, %v5315_v26  ;;  %v5327_v7 = vld [vmem:[#allocation16_spill] sm:$0xff] }
 0x1df   :  { %v5328_v8 = vpack.c.bf16 %v5326_v3, %v5327_v7 }
 0x1e0   :  { %2190 = vmatpush1.bf16.msra.mxu0 %v1116_v48  ;;  %2314 = vmatpush1.bf16.msra.mxu1 %v933_v27  ;;  %v4605_v58 = vpop.permute.xlu1 %1517  ;;  %v5329_v27 = vld [vmem:[#allocation53_spill] sm:$0xff]  ;;  %v5330_v48 = vld [vmem:[#allocation56_spill] sm:$0xff] }
 0x1e1   :  { %2191 = vmatprep.subr.bf16.mxu0 %v4396_v14  ;;  %2315 = vmatprep.subr.bf16.mxu1 %v1119_v40  ;;  %v4608_v4 = vpop.permute.xlu0 %1324  ;;  %v1334_v40 = vsel %vm1016_vm4, %v5330_v48, %v5329_v27 }
 0x1e2   :  { %v1342_v37 = vsel %vm1016_vm4, %v4608_v4, %v4489_v38 }
 0x1e4   :  { %2192 = vmatpush1.bf16.msra.mxu0 %v1120_v29  ;;  %2316 = vmatpush1.bf16.msra.mxu1 %v1118_v62  ;;  %v4618_v42 = vpop.permute.xlu1 %1521  ;;  %v5331_v62 = vld [vmem:[#allocation54_spill] sm:$0xff] }
 0x1e5   :  { %2193 = vmatprep.subr.bf16.mxu0 %v1125_v15  ;;  %2317 = vmatprep.subr.bf16.mxu1 %v4412_v45  ;;  %v4621_v14 = vpop.permute.xlu0 %1328  ;;  %v5332_v15 = vld [vmem:[#allocation26_spill] sm:$0xff] }
 0x1e6   :  { %v1344_v6 = vsel %vm1016_vm4, %v4621_v14, %v5341_v32  ;;  %v1343_v47 = vsel %vm1016_vm4, %v4489_v38, %v4621_v14  ;;  %v1528_v38 = vsel %vm823_vm3, %v4499_v44, %v4539_v2  ;;  %v1533_v14 = vsel %vm823_vm3, %v4541_v18, %v4595_v9  ;;  %v2772_v32 = vld [vmem:[%s4870_s3 + $0x28] ss:$16 sps:$4 sm:$0xff]  }
 0x1e8   :  { %2194 = vmatpush1.bf16.msra.mxu0 %v1124_v50  ;;  %2318 = vmatpush1.bf16.msra.mxu1 %v5306_v60  ;;  %v4631_v49 = vpop.permute.xlu1 %1515  ;;  %v5333_v50 = vpack.c.bf16 %v5331_v62, %v5332_v15  ;;  %v2758_v60 = vld [vmem:[%s4870_s3] ss:$16 sps:$4 sm:$0xff]  }
 0x1e9   :  { %2195 = vmatprep.subr.bf16.mxu0 %v1153_v57  ;;  %2319 = vmatprep.subr.bf16.mxu1 %v1127_v30  ;;  %v4633_v45 = vpop.permute.xlu0 %1519  ;;  %v1333_v57 = vsel %vm1016_vm4, %v5334_v31, %v5330_v48  ;;  %v5335_v30 = vld [vmem:[#allocation46_spill] sm:$0xff] }
 0x1ec   :  { %2196 = vmatpush1.bf16.msra.mxu0 %v1152_v21  ;;  %2320 = vmatpush1.bf16.msra.mxu1 %v1126_v23  ;;  %v4641_v17 = vpop.permute.xlu1 %1692  ;;  %v5337_v21 = vpack.c.bf16 %v5335_v30, %v5336_v24  ;;  %v5338_v23 = vld [vmem:[#allocation49_spill] sm:$0xff] }
 0x1ed   :  { %2197 = vmatprep.subr.bf16.mxu0 %v5312_v55  ;;  %2321 = vmatprep.subr.bf16.mxu1 %v1155_v19  ;;  %v4646_v36 = vpop.permute.xlu0 %1523  ;;  %v1336_v53 = vsel %vm1016_vm4, %v5339_v52, %v5338_v23  ;;  %v1335_v55 = vsel %vm1016_vm4, %v5329_v27, %v5339_v52 }
 0x1ee   :  { %v1537_v3 = vsel %vm823_vm3, %v4618_v42, %v4646_v36 }
 0x1f0   :  { %2198 = vmatpush1.bf16.msra.mxu0 %v5316_v41  ;;  %2322 = vmatpush1.bf16.msra.mxu1 %v1154_v28  ;;  %v4653_v46 = vpop.permute.xlu1 %1696  ;;  %v2763_v41 = vld [vmem:[%s4870_s3 + $0x20] ss:$16 sps:$4 sm:$0xff]  }
 0x1f1   :  { %2199 = vmatprep.subr.bf16.mxu0 %v5319_v25  ;;  %2323 = vmatprep.subr.bf16.mxu1 %v5322_v43  ;;  %v4661_v61 = vpop.permute.xlu0 %1690  ;;  %v1529_v43 = vsel %vm823_vm3, %v4539_v2, %v4510_v63  ;;  %v1535_v63 = vsel %vm823_vm3, %v4605_v58, %v4633_v45 }
 0x1f2   :  { %v1720_v9 = vsel %vm630_vm2, %v4661_v61, %v4641_v17 }
 0x1f4   :  { %2200 = vmatpush1.bf16.msra.mxu0 %v5325_v1  ;;  %2324 = vmatpush1.bf16.msra.mxu1 %v5328_v8  ;;  %v4672_v29 = vpop.permute.xlu1 %1700  ;;  %v1534_v1 = vsel %vm823_vm3, %v4631_v49, %v4605_v58 }
 0x1f5   :  { %2201 = vmatprep.subr.bf16.mxu0 %v1334_v40  ;;  %2325 = vmatprep.subr.bf16.mxu1 %v5333_v50  ;;  %v4677_v22 = vpop.permute.xlu0 %1694 }
 0x1f6   :  { %v1722_v36 = vsel %vm630_vm2, %v4677_v22, %v4653_v46 }
 0x1f8   :  { %2202 = vmatpush1.bf16.msra.mxu0 %v1333_v57  ;;  %2326 = vmatpush1.bf16.msra.mxu1 %v5337_v21  ;;  %v4691_v19 = vpop.permute.xlu1 %1704 }
 0x1f9   :  { %2234 = vmatprep.subr.bf16.mxu0 %v4423_v33  ;;  %2327 = vmatprep.subr.bf16.mxu1 %v1336_v53  ;;  %v4694_v5 = vpop.permute.xlu0 %1688  ;;  %v5340_v33 = vld [vmem:[#allocation51_spill] sm:$0xff] }
 0x1fa   :  { %v1340_v28 = vsel %vm1016_vm4, %v4430_v54, %v5340_v33  ;;  %v1527_v54 = vsel %vm823_vm3, %v4523_v20, %v4499_v44  ;;  %v1719_v58 = vsel %vm630_vm2, %v4694_v5, %v4661_v61 }
 0x1fb   :  { %2204 = vmatmul.mubr.bf16.vlgmr.msra.gmra.mrb[12].mxu0 %v2758_v60 }
 0x1fc   :  { %2235 = vmatpush1.bf16.msra.mxu0 %v4420_v13  ;;  %2328 = vmatpush1.bf16.msra.mxu1 %v1335_v55  ;;  %v4709_v11 = vpop.permute.xlu1 %1698  ;;  %v1341_v13 = vsel %vm1016_vm4, %v4491_v0, %v4608_v4  ;;  %v2764_v4 = vld [vmem:[%s4870_s3 + $0x44] ss:$16 sps:$4 sm:$0xff]  }
 0x1fd   :  { %2236 = vmatprep.subr.bf16.mxu0 %v1342_v37  ;;  %2360 = vmatprep.subr.bf16.mxu1 %v1340_v28  ;;  %v4711_v26 = vpop.permute.xlu0 %1702 }
 0x1fe   :  { %2213 = vmatprep.mubr.bf16.mxu0 %v2761_v51  ;;  %v1724_v49 = vsel %vm630_vm2, %v4672_v29, %v4711_v26 }
 0x1ff   :  { %2330 = vmatmul.mubr.bf16.vlgmr.msra.gmra.mrb[12].mxu1 %v2758_v60 }
 0x200   :  { %2237 = vmatpush1.bf16.msra.mxu0 %v1341_v13  ;;  %2361 = vmatpush1.bf16.msra.mxu1 %v4436_v10  ;;  %v4726_v25 = vpop.permute.xlu1 %1712  ;;  %v1526_v10 = vsel %vm823_vm3, %v4546_v56, %v4523_v20  ;;  %v1530_v20 = vsel %vm823_vm3, %v4571_v35, %v4528_v16  ;;  %v2766_v56 = vld [vmem:[%s4870_s3 + $0x40] ss:$16 sps:$4 sm:$0xff]   ;;  %v2769_v16 = vld [vmem:[%s4870_s3 + $0xc] ss:$16 sps:$4 sm:$0xff]   ;;  %v1532_v35 = vsel %vm823_vm3, %v4556_v12, %v4541_v18 }
 0x201   :  { %2238 = vmatprep.subr.bf16.mxu0 %v1527_v54  ;;  %2362 = vmatprep.subr.bf16.mxu1 %v1344_v6  ;;  %v1707_v0 = vpop.permute.xlu0 %1706  ;;  %v1536_v12 = vsel %vm823_vm3, %v4633_v45, %v4618_v42  ;;  %v1721_v42 = vsel %vm630_vm2, %v4641_v17, %v4677_v22  ;;  %v1723_v45 = vsel %vm630_vm2, %v4709_v11, %v4672_v29  ;;  %v2767_v11 = vld [vmem:[%s4870_s3 + $0x8] ss:$16 sps:$4 sm:$0xff]   ;;  %v2773_v6 = vld [vmem:[%s4870_s3 + $0x4c] ss:$16 sps:$4 sm:$0xff]  }
 0x202   :  { %2339 = vmatprep.mubr.bf16.mxu1 %v2761_v51  ;;  %v1726_v46 = vsel %vm630_vm2, %v4691_v19, %v1707_v0  ;;  %v1725_v17 = vsel %vm630_vm2, %v4711_v26, %v4691_v19  ;;  %v2770_v26 = vld [vmem:[%s4870_s3 + $0x2c] ss:$16 sps:$4 sm:$0xff]   ;;  %v5342_v0 = vmov 0.0  }
 0x203   :  { %2214 = vmatmul.mubr.bf16.gmra.mrb[16].mxu0 %v2763_v41 }
 0x204   :  { %2239 = vmatpush1.bf16.msra.mxu0 %v1526_v10  ;;  %2363 = vmatpush1.bf16.msra.mxu1 %v1343_v47  ;;  %v1717_v59 = vpop.permute.xlu1 %1716 }
 0x205   :  { %2240 = vmatprep.subr.bf16.mxu0 %v1531_v34  ;;  %2364 = vmatprep.subr.bf16.mxu1 %v1529_v43  ;;  %v1711_v39 = vpop.permute.xlu0 %1710 }
 0x206   :  { %2223 = vmatprep.mubr.bf16.mxu0 %v2764_v4  ;;  %v1728_v61 = vsel %vm630_vm2, %v1711_v39, %v4726_v25 }
 0x207   :  { %2340 = vmatmul.mubr.bf16.gmra.mrb[16].mxu1 %v2763_v41 }
 0x208   :  { %2241 = vmatpush1.bf16.msra.mxu0 %v1530_v20  ;;  %2365 = vmatpush1.bf16.msra.mxu1 %v1528_v38  ;;  %v1884_v44 = vpop.permute.xlu1 %1883 }
 0x209   :  { %2242 = vmatprep.subr.bf16.mxu0 %v1535_v63  ;;  %2366 = vmatprep.subr.bf16.mxu1 %v1533_v14  ;;  %v1715_v2 = vpop.permute.xlu0 %1714 }
 0x20a   :  { %2349 = vmatprep.mubr.bf16.mxu1 %v2764_v4  ;;  %v1730_v15 = vsel %vm630_vm2, %v1715_v2, %v1717_v59  ;;  %v1729_v31 = vsel %vm630_vm2, %v4726_v25, %v1715_v2  ;;  %v2775_v25 = vld [vmem:[%s4870_s3 + $0x48] ss:$16 sps:$4 sm:$0xff]  }
 0x20b   :  { %2224 = vmatmul.mubr.bf16.gmra.mrb[20].mxu0 %v2766_v56 }
 0x20c   :  { %2243 = vmatpush1.bf16.msra.mxu0 %v1534_v1  ;;  %2367 = vmatpush1.bf16.msra.mxu1 %v1532_v35  ;;  %v1888_v7 = vpop.permute.xlu1 %1887 }
 0x20d   :  { %2244 = vmatprep.subr.bf16.mxu0 %v1720_v9  ;;  %2368 = vmatprep.subr.bf16.mxu1 %v1537_v3  ;;  %v1709_v18 = vpop.permute.xlu0 %1708 }
 0x20e   :  { %2666 = vmatprep.mubr.msk.bf16.mxu0 %vm2161_vm9, %v2769_v16  ;;  %v1727_v62 = vsel %vm630_vm2, %v1709_v18, %v1711_v39 }
 0x20f   :  { %2350 = vmatmul.mubr.bf16.gmra.mrb[20].mxu1 %v2766_v56 }
 0x210   :  { %2245 = vmatpush1.bf16.msra.mxu0 %v1719_v58  ;;  %2369 = vmatpush1.bf16.msra.mxu1 %v1536_v12  ;;  %v1882_v8 = vpop.permute.xlu1 %1881 }
 0x211   :  { %2246 = vmatprep.subr.bf16.mxu0 %v1724_v49  ;;  %2370 = vmatprep.subr.bf16.mxu1 %v1722_v36  ;;  %v1886_v27 = vpop.permute.xlu0 %1885  ;;  %v1912_v57 = vsel %vm437_vm1, %v1882_v8, %v1884_v44 }
 0x212   :  { %2669 = vmatprep.mubr.msk.bf16.mxu1 %vm2161_vm9, %v2769_v16  ;;  %v1913_v29 = vsel %vm437_vm1, %v1884_v44, %v1886_v27  ;;  %v1914_v23 = vsel %vm437_vm1, %v1886_v27, %v1888_v7 }
 0x214   :  { %2247 = vmatpush1.bf16.msra.mxu0 %v1723_v45  ;;  %2371 = vmatpush1.bf16.msra.mxu1 %v1721_v42  ;;  %v1896_v48 = vpop.permute.xlu1 %1895 }
 0x215   :  { %2248 = vmatprep.subr.bf16.mxu0 %v1728_v61  ;;  %2372 = vmatprep.subr.bf16.mxu1 %v1726_v46  ;;  %v1890_v40 = vpop.permute.xlu0 %1889 }
 0x216   :  { %v1915_v30 = vsel %vm437_vm1, %v1888_v7, %v1890_v40 }
 0x218   :  { %2249 = vmatpush1.bf16.msra.mxu0 %v1727_v62  ;;  %2373 = vmatpush1.bf16.msra.mxu1 %v1725_v17  ;;  %v1900_v50 = vpop.permute.xlu1 %1899 }
 0x219   :  { %2250 = vmatprep.subr.bf16.mxu0 %v1913_v29  ;;  %2374 = vmatprep.subr.bf16.mxu1 %v1730_v15  ;;  %v1894_v22 = vpop.permute.xlu0 %1893 }
 0x21a   :  { %v1917_v60 = vsel %vm437_vm1, %v1894_v22, %v1896_v48 }
 0x21c   :  { %2251 = vmatpush1.bf16.msra.mxu0 %v1912_v57  ;;  %2375 = vmatpush1.bf16.msra.mxu1 %v1729_v31  ;;  %v1904_v24 = vpop.permute.xlu1 %1903 }
 0x21d   :  { %2252 = vmatprep.subr.bf16.mxu0 %v1917_v60  ;;  %2376 = vmatprep.subr.bf16.mxu1 %v1915_v30  ;;  %v1898_v21 = vpop.permute.xlu0 %1897 }
 0x21e   :  { %v1919_v52 = vsel %vm437_vm1, %v1898_v21, %v1900_v50  ;;  %v1918_v51 = vsel %vm437_vm1, %v1896_v48, %v1898_v21 }
 0x220   :  { %2377 = vmatpush1.bf16.msra.mxu1 %v1914_v23  ;;  %v1908_v53 = vpop.permute.xlu1 %1907 }
 0x221   :  { %2378 = vmatprep.subr.bf16.mxu1 %v1919_v52  ;;  %v1892_v19 = vpop.permute.xlu0 %1891 }
 0x222   :  { %v1916_v5 = vsel %vm437_vm1, %v1892_v19, %v1894_v22 }
 0x223   :  { %2253 = vmatpush1.bf16.msra.mxu0 %v1916_v5 }
 0x224   :  { %2379 = vmatpush1.bf16.msra.mxu1 %v1918_v51  ;;  %v1902_v55 = vpop.permute.xlu1 %1901 }
 0x225   :  { %v1906_v37 = vpop.permute.xlu0 %1905  ;;  %v1920_v33 = vsel %vm437_vm1, %v1902_v55, %v1904_v24 }
 0x226   :  { %v1921_v28 = vsel %vm437_vm1, %v1904_v24, %v1906_v37  ;;  %v1922_v54 = vsel %vm437_vm1, %v1906_v37, %v1908_v53 }
 0x227   :  { %2254 = vmatprep.subr.bf16.mxu0 %v1921_v28 }
 0x228   :  { %2255 = vmatpush1.bf16.msra.mxu0 %v1920_v33 }
 0x229   :  { %v1910_v13 = vpop.permute.xlu0 %1909 }
 0x22a   :  { %v1923_v41 = vsel %vm437_vm1, %v1908_v53, %v1910_v13 }
 0x22b   :  { %2267 = vmatmul.mubr.bf16.vlgmr.msra.gmra.mrb[12].mxu0 %v2767_v11  ;;  %2380 = vmatprep.subr.bf16.mxu1 %v1923_v41 }
 0x22c   :  { %2381 = vmatpush1.bf16.msra.mxu1 %v1922_v54  ;;  %2667 = vmatprep.mubr.msk.bf16.mxu0 %vm2161_vm9, %v2770_v26 }
 0x22f   :  { %2393 = vmatmul.mubr.bf16.vlgmr.msra.gmra.mrb[12].mxu1 %v2767_v11 }
 0x230   :  { %2670 = vmatprep.mubr.msk.bf16.mxu1 %vm2161_vm9, %v2770_v26 }
 0x233   :  { %2277 = vmatmul.mubr.bf16.gmra.mrb[16].mxu0 %v2772_v32 }
 0x234   :  { %2668 = vmatprep.mubr.msk.bf16.mxu0 %vm2161_vm9, %v2773_v6 }
 0x235   :  { %v2082_v43 = vpop.permute.xlu1 %2081 }
 0x237   :  { %2403 = vmatmul.mubr.bf16.gmra.mrb[16].mxu1 %v2772_v32 }
 0x238   :  { %2671 = vmatprep.mubr.msk.bf16.mxu1 %vm2161_vm9, %v2773_v6 }
 0x239   :  { %v2092_v62 = vpop.permute.xlu1 %2091 }
 0x23a   :  { %v2077_v4 = vpop.permute.xlu0 %2076 }
 0x23b   :  { %2287 = vmatmul.mubr.bf16.gmra.mrb[20].mxu0 %v2775_v25 }
 0x23c   :  { %2545 = vmatprep.mubr.f32.mxu0 %v5342_v0 }
 0x23e   :  { %v2087_v36 = vpop.permute.xlu0 %2086 }
 0x23f   :  { %2413 = vmatmul.mubr.bf16.gmra.mrb[20].mxu1 %v2775_v25 }
 0x240   :  { %2616 = vmatprep.mubr.f32.mxu1 %v5342_v0 }
 0x242   :  { %v2097_v25 = vpop.permute.xlu0 %2096 }
 0x2fe   :  { %v2268_v10 = vpop.f32.mrb[12].mxu0 }
 0x2ff   :  { %v2698_v47 = vadd.f32 %v2268_v10, %v2077_v4  ;;  %v2270_v34 = vpop.f32.mrb[13].mxu0 }
 0x300   :  { %v2699_v59 = vadd.f32 %v2270_v34, %v2077_v4  ;;  %v2272_v39 = vpop.f32.mrb[14].mxu0 }
 0x301   :  { %v2423_v38 = vmax.f32 %v2698_v47, 0.0  ;;  %v2700_v20 = vadd.f32 %v2272_v39, %v2082_v43  ;;  %v2274_v56 = vpop.f32.mrb[15].mxu0 }
 0x302   :  { %v2424_v63 = vmax.f32 %v2699_v59, 0.0  ;;  %v2701_v14 = vadd.f32 %v2274_v56, %v2082_v43  ;;  %v2394_v44 = vpop.f32.mrb[12].mxu1 }
 0x303   :  { %v2427_v2 = vmax.f32 %v2700_v20, 0.0  ;;  %v2710_v16 = vadd.f32 %v2394_v44, %v2077_v4  ;;  %v2396_v35 = vpop.f32.mrb[13].mxu1  ;;  %v2447_v7 = vmin.f32 %v2423_v38, 6.0  ;;  %v2102_v20 = vpop.permute.xlu1 %2101 }
 0x304   :  { %v2428_v1 = vmax.f32 %v2701_v14, 0.0  ;;  %v2711_v9 = vadd.f32 %v2396_v35, %v2077_v4  ;;  %v2398_v3 = vpop.f32.mrb[14].mxu1  ;;  %v2448_v8 = vmin.f32 %v2424_v63, 6.0 }
 0x305   :  { %v2451_v18 = vmin.f32 %v2427_v2, 6.0  ;;  %v2425_v12 = vmax.f32 %v2710_v16, 0.0  ;;  %v2712_v58 = vadd.f32 %v2398_v3, %v2082_v43  ;;  %v2400_v49 = vpop.f32.mrb[15].mxu1 }
 0x306   :  { %v2452_v27 = vmin.f32 %v2428_v1, 6.0  ;;  %v2426_v42 = vmax.f32 %v2711_v9, 0.0  ;;  %v2713_v45 = vadd.f32 %v2400_v49, %v2082_v43  ;;  %v2278_v61 = vpop.f32.mrb[16].mxu0 }
 0x307   :  { %v2676_v46 = vpack.c.bf16 %v2451_v18, %v2447_v7  ;;  %v2429_v48 = vmax.f32 %v2712_v58, 0.0  ;;  %v2702_v40 = vadd.f32 %v2278_v61, %v2087_v36  ;;  %v2280_v17 = vpop.f32.mrb[17].mxu0  ;;  %v2449_v31 = vmin.f32 %v2425_v12, 6.0 }
 0x308   :  { %v2674_v29 = vpack.c.bf16 %v2452_v27, %v2448_v8  ;;  %v2430_v15 = vmax.f32 %v2713_v45, 0.0  ;;  %v2703_v50 = vadd.f32 %v2280_v17, %v2087_v36  ;;  %v2282_v22 = vpop.f32.mrb[18].mxu0  ;;  %v2450_v21 = vmin.f32 %v2426_v42, 6.0 }
 0x309   :  { %v2453_v57 = vmin.f32 %v2429_v48, 6.0  ;;  %v2431_v60 = vmax.f32 %v2702_v40, 0.0  ;;  %v2704_v30 = vadd.f32 %v2282_v22, %v2092_v62  ;;  %v2284_v24 = vpop.f32.mrb[19].mxu0 }
 0x30a   :  { %v2454_v23 = vmin.f32 %v2430_v15, 6.0  ;;  %v2432_v52 = vmax.f32 %v2703_v50, 0.0  ;;  %v2705_v53 = vadd.f32 %v2284_v24, %v2092_v62  ;;  %v2404_v19 = vpop.f32.mrb[16].mxu1  ;;  %2675 = vmatprep.subr.bf16.mxu0 %v2674_v29 }
 0x30b   :  { %v2688_v5 = vpack.c.bf16 %v2453_v57, %v2449_v31  ;;  %v2435_v51 = vmax.f32 %v2704_v30, 0.0  ;;  %v2714_v55 = vadd.f32 %v2404_v19, %v2087_v36  ;;  %v2406_v37 = vpop.f32.mrb[17].mxu1  ;;  %2677 = vmatpush1.bf16.msra.mxu0 %v2676_v46  ;;  %v2455_v13 = vmin.f32 %v2431_v60, 6.0 }
 0x30c   :  { %v2686_v33 = vpack.c.bf16 %v2454_v23, %v2450_v21  ;;  %v2436_v28 = vmax.f32 %v2705_v53, 0.0  ;;  %v2715_v11 = vadd.f32 %v2406_v37, %v2087_v36  ;;  %v2408_v26 = vpop.f32.mrb[18].mxu1  ;;  %v2456_v0 = vmin.f32 %v2432_v52, 6.0 }
 0x30d   :  { %v2459_v41 = vmin.f32 %v2435_v51, 6.0  ;;  %v2433_v54 = vmax.f32 %v2714_v55, 0.0  ;;  %v2716_v32 = vadd.f32 %v2408_v26, %v2092_v62  ;;  %v2410_v6 = vpop.f32.mrb[19].mxu1  ;;  %v2476_v55 = vpop.permute.xlu0 %2475  ;;  %v2776_v26 = vld [vmem:[%s4866_s0] sm:$0xff] }
 0x30e   :  { %v2460_v4 = vmin.f32 %v2436_v28, 6.0  ;;  %v2434_v10 = vmax.f32 %v2715_v11, 0.0  ;;  %v2717_v47 = vadd.f32 %v2410_v6, %v2092_v62  ;;  %v2288_v34 = vpop.f32.mrb[20].mxu0  ;;  %2687 = vmatprep.subr.bf16.mxu1 %v2686_v33 }
 0x30f   :  { %v2680_v43 = vpack.c.bf16 %v2459_v41, %v2455_v13  ;;  %v2437_v59 = vmax.f32 %v2716_v32, 0.0  ;;  %v2706_v39 = vadd.f32 %v2288_v34, %v2097_v25  ;;  %v2290_v38 = vpop.f32.mrb[21].mxu0  ;;  %2689 = vmatpush1.bf16.msra.mxu1 %v2688_v5  ;;  %v2457_v2 = vmin.f32 %v2433_v54, 6.0  ;;  %v2471_v5 = vld [vmem:[%s4873_s5] sm:$0xff]  ;;  %v2777_v41 = vld [vmem:[%s4866_s0 + $0x8] sm:$0xff] }
 0x310   :  { %v2678_v56 = vpack.c.bf16 %v2460_v4, %v2456_v0  ;;  %v2438_v63 = vmax.f32 %v2717_v47, 0.0  ;;  %v2707_v14 = vadd.f32 %v2290_v38, %v2097_v25  ;;  %v2292_v44 = vpop.f32.mrb[22].mxu0  ;;  %v2458_v3 = vmin.f32 %v2434_v10, 6.0  ;;  %v2778_v4 = vld [vmem:[%s4866_s0 + $0x10] sm:$0xff]  ;;  %v2779_v47 = vld [vmem:[%s4866_s0 + $0x18] sm:$0xff] }
 0x311   :  { %v2461_v16 = vmin.f32 %v2437_v59, 6.0  ;;  %v2439_v35 = vmax.f32 %v2706_v39, 0.0  ;;  %v2708_v1 = vadd.f32 %v2292_v44, %v2102_v20  ;;  %v2294_v9 = vpop.f32.mrb[23].mxu0 }
 0x312   :  { %v2462_v7 = vmin.f32 %v2438_v63, 6.0  ;;  %v2440_v18 = vmax.f32 %v2707_v14, 0.0  ;;  %v2709_v12 = vadd.f32 %v2294_v9, %v2102_v20  ;;  %v2414_v58 = vpop.f32.mrb[20].mxu1  ;;  %2679 = vmatprep.subr.bf16.mxu0 %v2678_v56 }
 0x313   :  { %v2692_v49 = vpack.c.bf16 %v2461_v16, %v2457_v2  ;;  %v2443_v36 = vmax.f32 %v2708_v1, 0.0  ;;  %v2718_v8 = vadd.f32 %v2414_v58, %v2097_v25  ;;  %v2416_v27 = vpop.f32.mrb[21].mxu1  ;;  %2681 = vmatpush1.bf16.msra.mxu0 %v2680_v43  ;;  %v2463_v48 = vmin.f32 %v2439_v35, 6.0 }
 0x314   :  { %v2690_v42 = vpack.c.bf16 %v2462_v7, %v2458_v3  ;;  %v2444_v45 = vmax.f32 %v2709_v12, 0.0  ;;  %v2719_v61 = vadd.f32 %v2416_v27, %v2097_v25  ;;  %v2418_v46 = vpop.f32.mrb[22].mxu1  ;;  %v2464_v15 = vmin.f32 %v2440_v18, 6.0 }
 0x315   :  { %v2467_v40 = vmin.f32 %v2443_v36, 6.0  ;;  %v2441_v17 = vmax.f32 %v2718_v8, 0.0  ;;  %v2720_v62 = vadd.f32 %v2418_v46, %v2102_v20  ;;  %v2420_v29 = vpop.f32.mrb[23].mxu1 }
 0x316   :  { %v2468_v50 = vmin.f32 %v2444_v45, 6.0  ;;  %v2442_v22 = vmax.f32 %v2719_v61, 0.0  ;;  %v2721_v31 = vadd.f32 %v2420_v29, %v2102_v20  ;;  %2691 = vmatprep.subr.bf16.mxu1 %v2690_v42 }
 0x317   :  { %v2684_v57 = vpack.c.bf16 %v2467_v40, %v2463_v48  ;;  %v2445_v60 = vmax.f32 %v2720_v62, 0.0  ;;  %2693 = vmatpush1.bf16.msra.mxu1 %v2692_v49  ;;  %v2465_v21 = vmin.f32 %v2441_v17, 6.0 }
 0x318   :  { %v2682_v30 = vpack.c.bf16 %v2468_v50, %v2464_v15  ;;  %v2446_v24 = vmax.f32 %v2721_v31, 0.0  ;;  %v2466_v52 = vmin.f32 %v2442_v22, 6.0 }
 0x319   :  { %v2469_v23 = vmin.f32 %v2445_v60, 6.0 }
 0x31a   :  { %v2470_v53 = vmin.f32 %v2446_v24, 6.0  ;;  %2683 = vmatprep.subr.bf16.mxu0 %v2682_v30 }
 0x31b   :  { %v2696_v19 = vpack.c.bf16 %v2469_v23, %v2465_v21  ;;  %2685 = vmatpush1.bf16.msra.mxu0 %v2684_v57 }
 0x31c   :  { %v2694_v51 = vpack.c.bf16 %v2470_v53, %v2466_v52 }
 0x31e   :  { %2672 = vmatmul.mubr.msk.f32.vlgmr.msra.gmra.mrb[24].mxu0 %vm2161_vm9, %v2471_v5  ;;  %2695 = vmatprep.subr.bf16.mxu1 %v2694_v51 }
 0x31f   :  { %2697 = vmatpush1.bf16.msra.mxu1 %v2696_v19 }
 0x322   :  { %2673 = vmatmul.mubr.msk.f32.vlgmr.msra.gmra.mrb[24].mxu1 %vm2161_vm9, %v2471_v5 }
 0x3f1   :  { %v2547_v37 = vpop.f32.mrb[24].mxu0 }
 0x3f2   :  { %v2548_v33 = vadd.f32 %v2547_v37, %v2476_v55  ;;  %v2549_v28 = vpop.f32.mrb[25].mxu0 }
 0x3f3   :  { %v2550_v11 = vadd.f32 %v2549_v28, %v2476_v55 }
 0x3f4   :  { %v2623_v13 = vadd.f32 %v2776_v26, %v2548_v33 }
 0x3f5   :  { %v2624_v54 = vadd.f32 %v2777_v41, %v2550_v11  ;;  %v2618_v32 = vpop.f32.mrb[24].mxu1 }
 0x3f6   :  { %2627 = vst [vmem:[%s4874_s8] sm:$0xff] %v2623_v13  ;;  %v2619_v6 = vadd.f32 %v2618_v32, %v2476_v55  ;;  %v2620_v25 = vpop.f32.mrb[25].mxu1 }
 0x3f7   :  { %2628 = vst [vmem:[%s4874_s8 + $0x8] sm:$0xff] %v2624_v54  ;;  %v2621_v0 = vadd.f32 %v2620_v25, %v2476_v55 }
 0x3f8   :  { %v2625_v10 = vadd.f32 %v2778_v4, %v2619_v6 }
 0x3f9   :  { %v2626_v34 = vadd.f32 %v2779_v47, %v2621_v0 }
 0x3fa   :  { %2629 = vst [vmem:[%s4874_s8 + $0x10] sm:$0xff] %v2625_v10 }
 0x3fb   :  { %2630 = vst [vmem:[%s4874_s8 + $0x18] sm:$0xff] %v2626_v34 }

</bundles_post_ra>
